<compile_context>
chip_gen: v7x
topology: tpu7x:2x2x1
jax: 0.10.0
libtpu: 0.0.40
codegen_flags: <defaults>
</compile_context>

<pallas_src>
import math
import numpy as np
import jax
import jax.numpy as jnp
from jax.experimental import pallas as pl
from jax.experimental.pallas import tpu as pltpu

# ----- sizes (small, consistent with the module's forward) -----
B, S, S_ENC = 2, 8, 16        # batch, decoder seq, encoder seq
D, H, FFN = 32, 2, 64         # embedding_size, n_heads, ffn_size
L, V = 2, 128                 # n_layers, vocabulary_size
DPH = D // H                  # dim per head

RQ = H * B * S                # packed query rows (heads stacked along sublanes)
RK = H * B * S_ENC            # packed encoder-key rows

EMB_SCALE = math.sqrt(D)      # embeddings_scale=True
ATTN_SCALE = math.sqrt(DPH)
INV_ATTN_SCALE = 1.0 / ATTN_SCALE
LN_EPS = 1e-5
NEG = -1e20                   # masked_fill value used by ParlAI


# ===================== Pallas kernel (full decoder, one program) =====================

def decoder_kernel(tok_ref, emb_ref, pos_ref, enc_ref, self_bias_ref, cross_bias_ref,
                   sa_wqkv_ref, sa_bqkv_ref, sa_wo_ref, sa_bo_ref,
                   n1_g_ref, n1_b_ref,
                   ea_wq_ref, ea_bq_ref, ea_wkv_all_ref, ea_bkv_all_ref,
                   ea_wo_ref, ea_bo_ref,
                   n2_g_ref, n2_b_ref,
                   ff_w1_ref, ff_b1_ref, ff_w2_ref, ff_b2_ref,
                   n3_g_ref, n3_b_ref,
                   out_ref):
    f32 = jnp.float32

    # ---- token embedding as a one-hot matmul (exact gather on the MXU) ----
    tok = tok_ref[...]                                                # (B*S, 1) int32
    vocab_iota = jax.lax.broadcasted_iota(jnp.int32, (B * S, V), 1)
    onehot = (tok == vocab_iota).astype(f32)                          # (B*S, V)
    x = jnp.dot(onehot, emb_ref[...], preferred_element_type=f32)     # (B*S, D)
    x = x * EMB_SCALE + pos_ref[...]                                  # pos pre-tiled host-side

    enc = enc_ref[...]                                                # (B*S_ENC, D)
    self_bias = self_bias_ref[...]                                    # (RQ, RQ)  0 / NEG
    cross_bias = cross_bias_ref[...]                                  # (RQ, RK)  0 / NEG

    def layer_norm(h, g, b):
        mu = jnp.mean(h, axis=-1, keepdims=True)
        d = h - mu
        var = jnp.mean(d * d, axis=-1, keepdims=True)
        return d * jax.lax.rsqrt(var + LN_EPS) * g + b

    def pack_heads(t, col_off):
        # (rows, >=col_off+D) -> (H*rows, DPH), heads stacked head-major along sublanes.
        return jnp.concatenate(
            [t[:, col_off + h * DPH: col_off + (h + 1) * DPH] for h in range(H)], axis=0)

    def unpack_heads(tp, rows):
        # (H*rows, DPH) head-major -> (rows, D) with head h at columns [h*DPH:(h+1)*DPH].
        return jnp.concatenate([tp[h * rows:(h + 1) * rows, :] for h in range(H)], axis=1)

    def packed_attention(qp, kp, vp, bias):
        """One scores matmul + softmax + P@V over the packed (block-diagonal) layout.

        qp: (RQ, DPH) already scaled by 1/sqrt(DPH); kp, vp: (Rk, DPH);
        bias: (RQ, Rk) additive mask (0 for valid same-(b,h) positions, -1e20 otherwise).
        """
        scores = jax.lax.dot_general(qp, kp, (((1,), (1,)), ((), ())),
                                     preferred_element_type=f32) + bias
        scores = scores - jnp.max(scores, axis=-1, keepdims=True)
        p = jnp.exp(scores)
        p = p / jnp.sum(p, axis=-1, keepdims=True)                     # exact softmax denom
        ctxp = jnp.dot(p, vp, preferred_element_type=f32)              # (RQ, DPH)
        return unpack_heads(ctxp, B * S)                               # (B*S, D)

    # ---- cross-attention K/V for ALL layers: one lane-dense (32,32)x(32,128) matmul ----
    kv_all = jnp.dot(enc, ea_wkv_all_ref[...], preferred_element_type=f32) \
        + ea_bkv_all_ref[...]                                          # (B*S_ENC, L*2D)
    kp_cross, vp_cross = [], []
    for l in range(L):
        base = l * 2 * D
        kp_cross.append(pack_heads(kv_all, base))                      # (RK, DPH)
        vp_cross.append(pack_heads(kv_all, base + D))                  # (RK, DPH)

    for l in range(L):                                                 # static unroll over layers
        # ---- masked (causal) self-attention, fused QKV, packed heads ----
        residual = x
        qkv = jnp.dot(x, sa_wqkv_ref[l], preferred_element_type=f32) + sa_bqkv_ref[l]
        qp = pack_heads(qkv, 0) * INV_ATTN_SCALE                       # scale folded into Q
        kp = pack_heads(qkv, D)
        vp = pack_heads(qkv, 2 * D)
        ctx = packed_attention(qp, kp, vp, self_bias)
        x = jnp.dot(ctx, sa_wo_ref[l], preferred_element_type=f32) + sa_bo_ref[l]
        x = layer_norm(x + residual, n1_g_ref[l], n1_b_ref[l])

        # ---- encoder (cross) attention: per-layer Q only; K/V hoisted above ----
        residual = x
        q = jnp.dot(x, ea_wq_ref[l], preferred_element_type=f32) + ea_bq_ref[l]
        qp = pack_heads(q, 0) * INV_ATTN_SCALE
        ctx = packed_attention(qp, kp_cross[l], vp_cross[l], cross_bias)
        x = jnp.dot(ctx, ea_wo_ref[l], preferred_element_type=f32) + ea_bo_ref[l]
        x = layer_norm(residual + x, n2_g_ref[l], n2_b_ref[l])

        # ---- feed-forward (dropout p=0 -> identity) ----
        residual = x
        hid = jnp.maximum(
            jnp.dot(x, ff_w1_ref[l], preferred_element_type=f32) + ff_b1_ref[l], 0.0)
        x = jnp.dot(hid, ff_w2_ref[l], preferred_element_type=f32) + ff_b2_ref[l]
        x = layer_norm(residual + x, n3_g_ref[l], n3_b_ref[l])

    out_ref[...] = x                                                   # (B*S, D)


# ===================== wrapper =====================

@jax.jit
def decoder_forward(tokens, encoder_output, encoder_mask, p):
    """Mirrors TransformerDecoder.forward(input, (encoder_output, encoder_mask))."""
    tok2d = tokens.reshape(B * S, 1).astype(jnp.int32)
    enc2d = encoder_output.reshape(B * S_ENC, D).astype(jnp.float32)

    # Precomputed additive attention biases for the packed (head-major) layout.
    # Packed row/col r = h*B*S(+ENC) + b*S(+ENC) + s  ->  block id = r // S(_ENC) = h*B + b.
    q_blk = jnp.arange(RQ, dtype=jnp.int32) // S
    q_pos = jnp.arange(RQ, dtype=jnp.int32) % S
    self_ok = (q_blk[:, None] == q_blk[None, :]) & (q_pos[:, None] >= q_pos[None, :])
    self_bias = jnp.where(self_ok, 0.0, NEG).astype(jnp.float32)        # (RQ, RQ)

    k_blk = jnp.arange(RK, dtype=jnp.int32) // S_ENC
    encm_col = jnp.tile(encoder_mask.reshape(-1), (H,)) > 0.5           # (RK,)
    cross_ok = (q_blk[:, None] == k_blk[None, :]) & encm_col[None, :]
    cross_bias = jnp.where(cross_ok, 0.0, NEG).astype(jnp.float32)      # (RQ, RK)

    args = (tok2d, p["emb"], p["pos_bsd"], enc2d, self_bias, cross_bias,
            p["sa_wqkv"], p["sa_bqkv"], p["sa_wo"], p["sa_bo"],
            p["n1_g"], p["n1_b"],
            p["ea_wq"], p["ea_bq"], p["ea_wkv_all"], p["ea_bkv_all"],
            p["ea_wo"], p["ea_bo"],
            p["n2_g"], p["n2_b"],
            p["ff_w1"], p["ff_b1"], p["ff_w2"], p["ff_b2"],
            p["n3_g"], p["n3_b"])

    vmem_spec = pl.BlockSpec(memory_space=pltpu.MemorySpace.VMEM)       # whole array, resident
    out2d = pl.pallas_call(
        decoder_kernel,
        out_shape=jax.ShapeDtypeStruct((B * S, D), jnp.float32),
        in_specs=[vmem_spec] * len(args),
        out_specs=vmem_spec,
    )(*args)
    return out2d.reshape(B, S, D), None                                 # (tensor, None)


# ===================== pure-JAX reference =====================

def ref_decoder(tokens, enc_out, enc_mask, p):
    x = p["emb"][tokens] * EMB_SCALE + p["pos"][None, :, :]
    causal = jnp.tril(jnp.ones((S, S), dtype=bool))[None, None, :, :]
    encm = (enc_mask > 0.5)[:, None, None, :]

    def layer_norm(h, g, b):
        mu = jnp.mean(h, axis=-1, keepdims=True)
        var = jnp.mean((h - mu) ** 2, axis=-1, keepdims=True)
        return (h - mu) * jax.lax.rsqrt(var + LN_EPS) * g + b

    def mha(q_in, kv_in, wq, bq, wk, bk, wv, bv, wo, bo, mask):
        s_q, s_k = q_in.shape[1], kv_in.shape[1]
        q = (q_in @ wq + bq).reshape(B, s_q, H, DPH).transpose(0, 2, 1, 3)
        k = (kv_in @ wk + bk).reshape(B, s_k, H, DPH).transpose(0, 2, 1, 3)
        v = (kv_in @ wv + bv).reshape(B, s_k, H, DPH).transpose(0, 2, 1, 3)
        scores = jnp.einsum("bhqd,bhkd->bhqk", q, k)
        scores = jnp.where(mask, scores, NEG) / ATTN_SCALE
        w = jax.nn.softmax(scores, axis=-1)
        ctx = jnp.einsum("bhqk,bhkd->bhqd", w, v)
        ctx = ctx.transpose(0, 2, 1, 3).reshape(B, s_q, D)
        return ctx @ wo + bo

    for l in range(L):
        wqkv, bqkv = p["sa_wqkv"][l], p["sa_bqkv"][l][0]
        res = x
        a = mha(x, x, wqkv[:, :D], bqkv[:D], wqkv[:, D:2 * D], bqkv[D:2 * D],
                wqkv[:, 2 * D:], bqkv[2 * D:], p["sa_wo"][l], p["sa_bo"][l][0], causal)
        x = layer_norm(a + res, p["n1_g"][l][0], p["n1_b"][l][0])

        base = l * 2 * D
        wk = p["ea_wkv_all"][:, base:base + D]
        bk = p["ea_bkv_all"][0, base:base + D]
        wv = p["ea_wkv_all"][:, base + D:base + 2 * D]
        bv = p["ea_bkv_all"][0, base + D:base + 2 * D]
        res = x
        a = mha(x, enc_out, p["ea_wq"][l], p["ea_bq"][l][0], wk, bk, wv, bv,
                p["ea_wo"][l], p["ea_bo"][l][0], encm)
        x = layer_norm(res + a, p["n2_g"][l][0], p["n2_b"][l][0])

        res = x
        h = jax.nn.relu(x @ p["ff_w1"][l] + p["ff_b1"][l][0])
        x = layer_norm(res + (h @ p["ff_w2"][l] + p["ff_b2"][l][0]),
                       p["n3_g"][l][0], p["n3_b"][l][0])
    return x


# ===================== params / main =====================

def init_params(key):
    ks = iter(jax.random.split(key, 32))

    def nrm(shape, scale=0.1):
        return (scale * jax.random.normal(next(ks), shape)).astype(jnp.float32)

    # create_position_codes (sinusoidal), learn_positional_embeddings=False
    pe = np.array([[pos / np.power(10000.0, 2 * (j // 2) / D) for j in range(D)]
                   for pos in range(S)], dtype=np.float64)
    pos = np.zeros((S, D), np.float32)
    pos[:, 0::2] = np.sin(pe[:, 0::2])
    pos[:, 1::2] = np.cos(pe[:, 1::2])

    ones = jnp.ones((L, 1, D), jnp.float32)
    zeros = jnp.zeros((L, 1, D), jnp.float32)
    return {
        "emb": nrm((V, D), 0.5),
        "pos": jnp.asarray(pos),                        # (S, D) for the reference
        "pos_bsd": jnp.asarray(np.tile(pos, (B, 1))),   # (B*S, D) pre-tiled for the kernel
        # self-attention (fused QKV) + out projection
        "sa_wqkv": nrm((L, D, 3 * D)), "sa_bqkv": nrm((L, 1, 3 * D), 0.02),
        "sa_wo": nrm((L, D, D)),       "sa_bo": nrm((L, 1, D), 0.02),
        "n1_g": ones, "n1_b": zeros,
        # encoder (cross) attention: per-layer Q; K/V fused across all layers (D, L*2D)
        "ea_wq": nrm((L, D, D)),           "ea_bq": nrm((L, 1, D), 0.02),
        "ea_wkv_all": nrm((D, L * 2 * D)), "ea_bkv_all": nrm((1, L * 2 * D), 0.02),
        "ea_wo": nrm((L, D, D)),           "ea_bo": nrm((L, 1, D), 0.02),
        "n2_g": ones, "n2_b": zeros,
        # FFN
        "ff_w1": nrm((L, D, FFN)),     "ff_b1": nrm((L, 1, FFN), 0.02),
        "ff_w2": nrm((L, FFN, D)),     "ff_b2": nrm((L, 1, D), 0.02),
        "n3_g": ones, "n3_b": zeros,
    }


if __name__ == "__main__":
    key = jax.random.PRNGKey(0)
    k_tok, k_enc, k_par = jax.random.split(key, 3)

    tokens = jax.random.randint(k_tok, (B, S), 0, V, dtype=jnp.int32)
    encoder_output = jax.random.normal(k_enc, (B, S_ENC, D), dtype=jnp.float32)
    lengths = jnp.array([S_ENC, 11], jnp.int32)          # batch 1 has padding
    encoder_mask = (jnp.arange(S_ENC)[None, :] < lengths[:, None]).astype(jnp.float32)
    params = init_params(k_par)

    out, _ = decoder_forward(tokens, encoder_output, encoder_mask, params)
    out = jax.block_until_ready(out)

    ref = ref_decoder(tokens, encoder_output, encoder_mask, params)
    assert out.shape == (B, S, D)
    # softmax is now exact; tolerance covers MXU vs XLA f32 matmul rounding only
    assert jnp.allclose(out, ref, rtol=1e-2, atol=1e-2), "mismatch vs JAX reference"
    print("KERNEL_OK")
</pallas_src>

<mosaic_0001>
module attributes {stable_mosaic.version = 11 : i64} {
  func.func @decoder_kernel(%arg0: memref<16x1xi32, #tpu.memory_space<vmem>>, %arg1: memref<128x32xf32, #tpu.memory_space<vmem>>, %arg2: memref<16x32xf32, #tpu.memory_space<vmem>>, %arg3: memref<32x32xf32, #tpu.memory_space<vmem>>, %arg4: memref<32x32xf32, #tpu.memory_space<vmem>>, %arg5: memref<32x64xf32, #tpu.memory_space<vmem>>, %arg6: memref<2x32x96xf32, #tpu.memory_space<vmem>>, %arg7: memref<2x1x96xf32, #tpu.memory_space<vmem>>, %arg8: memref<2x32x32xf32, #tpu.memory_space<vmem>>, %arg9: memref<2x1x32xf32, #tpu.memory_space<vmem>>, %arg10: memref<2x1x32xf32, #tpu.memory_space<vmem>>, %arg11: memref<2x1x32xf32, #tpu.memory_space<vmem>>, %arg12: memref<2x32x32xf32, #tpu.memory_space<vmem>>, %arg13: memref<2x1x32xf32, #tpu.memory_space<vmem>>, %arg14: memref<32x128xf32, #tpu.memory_space<vmem>>, %arg15: memref<1x128xf32, #tpu.memory_space<vmem>>, %arg16: memref<2x32x32xf32, #tpu.memory_space<vmem>>, %arg17: memref<2x1x32xf32, #tpu.memory_space<vmem>>, %arg18: memref<2x1x32xf32, #tpu.memory_space<vmem>>, %arg19: memref<2x1x32xf32, #tpu.memory_space<vmem>>, %arg20: memref<2x32x64xf32, #tpu.memory_space<vmem>>, %arg21: memref<2x1x64xf32, #tpu.memory_space<vmem>>, %arg22: memref<2x64x32xf32, #tpu.memory_space<vmem>>, %arg23: memref<2x1x32xf32, #tpu.memory_space<vmem>>, %arg24: memref<2x1x32xf32, #tpu.memory_space<vmem>>, %arg25: memref<2x1x32xf32, #tpu.memory_space<vmem>>, %arg26: memref<16x32xf32, #tpu.memory_space<vmem>>) attributes {dimension_semantics = [], scalar_prefetch = 0 : i64, scratch_operands = 0 : i64, tpu.core_type = #tpu.core_type<tc>} {
    %c0 = arith.constant 0 : index
    %c0_0 = arith.constant 0 : index
    %0 = vector.load %arg0[%c0, %c0_0] : memref<16x1xi32, #tpu.memory_space<vmem>>, vector<16x1xi32>
    %1 = tpu.iota {dimensions = array<i32: 1>} : vector<16x128xi32>
    %2 = vector.broadcast %0 : vector<16x1xi32> to vector<16x128xi32>
    %3 = arith.cmpi eq, %2, %1 : vector<16x128xi32>
    %4 = arith.extui %3 : vector<16x128xi1> to vector<16x128xi32>
    %5 = arith.sitofp %4 : vector<16x128xi32> to vector<16x128xf32>
    %c0_1 = arith.constant 0 : index
    %c0_2 = arith.constant 0 : index
    %6 = vector.load %arg1[%c0_1, %c0_2] : memref<128x32xf32, #tpu.memory_space<vmem>>, vector<128x32xf32>
    %cst = arith.constant dense<0.000000e+00> : vector<16x32xf32>
    %7 = tpu.matmul %5, %6, %cst {dimension_numbers = #tpu.dot_dimension_numbers<[1], [0], [0], [1], [0, 0, 1, 1], [], []>} : vector<16x128xf32>, vector<128x32xf32>, vector<16x32xf32> -> vector<16x32xf32>
    %cst_3 = arith.constant 5.65685415 : f32
    %8 = vector.broadcast %cst_3 : f32 to vector<16x32xf32>
    %9 = arith.mulf %7, %8 : vector<16x32xf32>
    %c0_4 = arith.constant 0 : index
    %c0_5 = arith.constant 0 : index
    %10 = vector.load %arg2[%c0_4, %c0_5] : memref<16x32xf32, #tpu.memory_space<vmem>>, vector<16x32xf32>
    %11 = arith.addf %9, %10 : vector<16x32xf32>
    %c0_6 = arith.constant 0 : index
    %c0_7 = arith.constant 0 : index
    %12 = vector.load %arg3[%c0_6, %c0_7] : memref<32x32xf32, #tpu.memory_space<vmem>>, vector<32x32xf32>
    %c0_8 = arith.constant 0 : index
    %c0_9 = arith.constant 0 : index
    %13 = vector.load %arg4[%c0_8, %c0_9] : memref<32x32xf32, #tpu.memory_space<vmem>>, vector<32x32xf32>
    %c0_10 = arith.constant 0 : index
    %c0_11 = arith.constant 0 : index
    %14 = vector.load %arg5[%c0_10, %c0_11] : memref<32x64xf32, #tpu.memory_space<vmem>>, vector<32x64xf32>
    %c0_12 = arith.constant 0 : index
    %c0_13 = arith.constant 0 : index
    %15 = vector.load %arg14[%c0_12, %c0_13] : memref<32x128xf32, #tpu.memory_space<vmem>>, vector<32x128xf32>
    %cst_14 = arith.constant dense<0.000000e+00> : vector<32x128xf32>
    %16 = tpu.matmul %12, %15, %cst_14 {dimension_numbers = #tpu.dot_dimension_numbers<[1], [0], [0], [1], [0, 0, 1, 1], [], []>} : vector<32x32xf32>, vector<32x128xf32>, vector<32x128xf32> -> vector<32x128xf32>
    %c0_15 = arith.constant 0 : index
    %c0_16 = arith.constant 0 : index
    %17 = vector.load %arg15[%c0_15, %c0_16] : memref<1x128xf32, #tpu.memory_space<vmem>>, vector<1x128xf32>
    %18 = vector.broadcast %17 : vector<1x128xf32> to vector<32x128xf32>
    %19 = arith.addf %16, %18 : vector<32x128xf32>
    %20 = vector.extract_strided_slice %19 {offsets = [0, 0], sizes = [32, 16], strides = [1, 1]} : vector<32x128xf32> to vector<32x16xf32>
    %21 = vector.extract_strided_slice %19 {offsets = [0, 16], sizes = [32, 16], strides = [1, 1]} : vector<32x128xf32> to vector<32x16xf32>
    %22 = tpu.concatenate %20, %21 in 0 : vector<32x16xf32>, vector<32x16xf32> -> vector<64x16xf32>
    %23 = vector.extract_strided_slice %19 {offsets = [0, 32], sizes = [32, 16], strides = [1, 1]} : vector<32x128xf32> to vector<32x16xf32>
    %24 = vector.extract_strided_slice %19 {offsets = [0, 48], sizes = [32, 16], strides = [1, 1]} : vector<32x128xf32> to vector<32x16xf32>
    %25 = tpu.concatenate %23, %24 in 0 : vector<32x16xf32>, vector<32x16xf32> -> vector<64x16xf32>
    %26 = vector.extract_strided_slice %19 {offsets = [0, 64], sizes = [32, 16], strides = [1, 1]} : vector<32x128xf32> to vector<32x16xf32>
    %27 = vector.extract_strided_slice %19 {offsets = [0, 80], sizes = [32, 16], strides = [1, 1]} : vector<32x128xf32> to vector<32x16xf32>
    %28 = tpu.concatenate %26, %27 in 0 : vector<32x16xf32>, vector<32x16xf32> -> vector<64x16xf32>
    %29 = vector.extract_strided_slice %19 {offsets = [0, 96], sizes = [32, 16], strides = [1, 1]} : vector<32x128xf32> to vector<32x16xf32>
    %30 = vector.extract_strided_slice %19 {offsets = [0, 112], sizes = [32, 16], strides = [1, 1]} : vector<32x128xf32> to vector<32x16xf32>
    %31 = tpu.concatenate %29, %30 in 0 : vector<32x16xf32>, vector<32x16xf32> -> vector<64x16xf32>
    %c0_17 = arith.constant 0 : index
    %c0_18 = arith.constant 0 : index
    %c0_19 = arith.constant 0 : index
    %32 = vector.load %arg6[%c0_17, %c0_18, %c0_19] : memref<2x32x96xf32, #tpu.memory_space<vmem>>, vector<1x32x96xf32>
    %33 = vector.shape_cast %32 : vector<1x32x96xf32> to vector<32x96xf32>
    %cst_20 = arith.constant dense<0.000000e+00> : vector<16x96xf32>
    %34 = tpu.matmul %11, %33, %cst_20 {dimension_numbers = #tpu.dot_dimension_numbers<[1], [0], [0], [1], [0, 0, 1, 1], [], []>} : vector<16x32xf32>, vector<32x96xf32>, vector<16x96xf32> -> vector<16x96xf32>
    %c0_21 = arith.constant 0 : index
    %c0_22 = arith.constant 0 : index
    %c0_23 = arith.constant 0 : index
    %35 = vector.load %arg7[%c0_21, %c0_22, %c0_23] : memref<2x1x96xf32, #tpu.memory_space<vmem>>, vector<1x1x96xf32>
    %36 = vector.shape_cast %35 : vector<1x1x96xf32> to vector<1x96xf32>
    %37 = vector.broadcast %36 : vector<1x96xf32> to vector<16x96xf32>
    %38 = arith.addf %34, %37 : vector<16x96xf32>
    %39 = vector.extract_strided_slice %38 {offsets = [0, 0], sizes = [16, 16], strides = [1, 1]} : vector<16x96xf32> to vector<16x16xf32>
    %40 = vector.extract_strided_slice %38 {offsets = [0, 16], sizes = [16, 16], strides = [1, 1]} : vector<16x96xf32> to vector<16x16xf32>
    %41 = tpu.concatenate %39, %40 in 0 : vector<16x16xf32>, vector<16x16xf32> -> vector<32x16xf32>
    %cst_24 = arith.constant 2.500000e-01 : f32
    %42 = vector.broadcast %cst_24 : f32 to vector<32x16xf32>
    %43 = arith.mulf %41, %42 : vector<32x16xf32>
    %44 = vector.extract_strided_slice %38 {offsets = [0, 32], sizes = [16, 16], strides = [1, 1]} : vector<16x96xf32> to vector<16x16xf32>
    %45 = vector.extract_strided_slice %38 {offsets = [0, 48], sizes = [16, 16], strides = [1, 1]} : vector<16x96xf32> to vector<16x16xf32>
    %46 = tpu.concatenate %44, %45 in 0 : vector<16x16xf32>, vector<16x16xf32> -> vector<32x16xf32>
    %47 = vector.extract_strided_slice %38 {offsets = [0, 64], sizes = [16, 16], strides = [1, 1]} : vector<16x96xf32> to vector<16x16xf32>
    %48 = vector.extract_strided_slice %38 {offsets = [0, 80], sizes = [16, 16], strides = [1, 1]} : vector<16x96xf32> to vector<16x16xf32>
    %49 = tpu.concatenate %47, %48 in 0 : vector<16x16xf32>, vector<16x16xf32> -> vector<32x16xf32>
    %cst_25 = arith.constant dense<0.000000e+00> : vector<32x32xf32>
    %50 = tpu.matmul %43, %46, %cst_25 {dimension_numbers = #tpu.dot_dimension_numbers<[1], [1], [0], [0], [0, 0, 1, 0], [], []>} : vector<32x16xf32>, vector<32x16xf32>, vector<32x32xf32> -> vector<32x32xf32>
    %51 = arith.addf %50, %13 : vector<32x32xf32>
    %cst_26 = arith.constant dense<0xFF800000> : vector<32xf32>
    %52 = vector.multi_reduction <maximumf>, %51, %cst_26 [1] : vector<32x32xf32> to vector<32xf32>
    %53 = vector.shape_cast %52 : vector<32xf32> to vector<32x1xf32>
    %54 = vector.broadcast %53 : vector<32x1xf32> to vector<32x32xf32>
    %55 = arith.subf %51, %54 : vector<32x32xf32>
    %56 = math.exp %55 : vector<32x32xf32>
    %cst_27 = arith.constant dense<0.000000e+00> : vector<32xf32>
    %57 = vector.multi_reduction <add>, %56, %cst_27 [1] : vector<32x32xf32> to vector<32xf32>
    %58 = vector.shape_cast %57 : vector<32xf32> to vector<32x1xf32>
    %59 = vector.broadcast %58 : vector<32x1xf32> to vector<32x32xf32>
    %60 = arith.divf %56, %59 : vector<32x32xf32>
    %cst_28 = arith.constant dense<0.000000e+00> : vector<32x16xf32>
    %61 = tpu.matmul %60, %49, %cst_28 {dimension_numbers = #tpu.dot_dimension_numbers<[1], [0], [0], [1], [0, 0, 1, 1], [], []>} : vector<32x32xf32>, vector<32x16xf32>, vector<32x16xf32> -> vector<32x16xf32>
    %62 = vector.extract_strided_slice %61 {offsets = [0, 0], sizes = [16, 16], strides = [1, 1]} : vector<32x16xf32> to vector<16x16xf32>
    %63 = vector.extract_strided_slice %61 {offsets = [16, 0], sizes = [16, 16], strides = [1, 1]} : vector<32x16xf32> to vector<16x16xf32>
    %64 = tpu.concatenate %62, %63 in 1 : vector<16x16xf32>, vector<16x16xf32> -> vector<16x32xf32>
    %c0_29 = arith.constant 0 : index
    %c0_30 = arith.constant 0 : index
    %c0_31 = arith.constant 0 : index
    %65 = vector.load %arg8[%c0_29, %c0_30, %c0_31] : memref<2x32x32xf32, #tpu.memory_space<vmem>>, vector<1x32x32xf32>
    %66 = vector.shape_cast %65 : vector<1x32x32xf32> to vector<32x32xf32>
    %cst_32 = arith.constant dense<0.000000e+00> : vector<16x32xf32>
    %67 = tpu.matmul %64, %66, %cst_32 {dimension_numbers = #tpu.dot_dimension_numbers<[1], [0], [0], [1], [0, 0, 1, 1], [], []>} : vector<16x32xf32>, vector<32x32xf32>, vector<16x32xf32> -> vector<16x32xf32>
    %c0_33 = arith.constant 0 : index
    %c0_34 = arith.constant 0 : index
    %c0_35 = arith.constant 0 : index
    %68 = vector.load %arg9[%c0_33, %c0_34, %c0_35] : memref<2x1x32xf32, #tpu.memory_space<vmem>>, vector<1x1x32xf32>
    %69 = vector.shape_cast %68 : vector<1x1x32xf32> to vector<1x32xf32>
    %70 = vector.broadcast %69 : vector<1x32xf32> to vector<16x32xf32>
    %71 = arith.addf %67, %70 : vector<16x32xf32>
    %72 = arith.addf %71, %11 : vector<16x32xf32>
    %c0_36 = arith.constant 0 : index
    %c0_37 = arith.constant 0 : index
    %c0_38 = arith.constant 0 : index
    %73 = vector.load %arg10[%c0_36, %c0_37, %c0_38] : memref<2x1x32xf32, #tpu.memory_space<vmem>>, vector<1x1x32xf32>
    %74 = vector.shape_cast %73 : vector<1x1x32xf32> to vector<1x32xf32>
    %c0_39 = arith.constant 0 : index
    %c0_40 = arith.constant 0 : index
    %c0_41 = arith.constant 0 : index
    %75 = vector.load %arg11[%c0_39, %c0_40, %c0_41] : memref<2x1x32xf32, #tpu.memory_space<vmem>>, vector<1x1x32xf32>
    %76 = vector.shape_cast %75 : vector<1x1x32xf32> to vector<1x32xf32>
    %cst_42 = arith.constant dense<0.000000e+00> : vector<16xf32>
    %77 = vector.multi_reduction <add>, %72, %cst_42 [1] : vector<16x32xf32> to vector<16xf32>
    %78 = vector.shape_cast %77 : vector<16xf32> to vector<16x1xf32>
    %cst_43 = arith.constant 3.200000e+01 : f32
    %79 = vector.broadcast %cst_43 : f32 to vector<16x1xf32>
    %80 = arith.divf %78, %79 : vector<16x1xf32>
    %81 = vector.broadcast %80 : vector<16x1xf32> to vector<16x32xf32>
    %82 = arith.subf %72, %81 : vector<16x32xf32>
    %83 = arith.mulf %82, %82 : vector<16x32xf32>
    %cst_44 = arith.constant dense<0.000000e+00> : vector<16xf32>
    %84 = vector.multi_reduction <add>, %83, %cst_44 [1] : vector<16x32xf32> to vector<16xf32>
    %85 = vector.shape_cast %84 : vector<16xf32> to vector<16x1xf32>
    %cst_45 = arith.constant 3.200000e+01 : f32
    %86 = vector.broadcast %cst_45 : f32 to vector<16x1xf32>
    %87 = arith.divf %85, %86 : vector<16x1xf32>
    %cst_46 = arith.constant 9.99999974E-6 : f32
    %88 = vector.broadcast %cst_46 : f32 to vector<16x1xf32>
    %89 = arith.addf %87, %88 : vector<16x1xf32>
    %90 = math.rsqrt %89 : vector<16x1xf32>
    %91 = vector.broadcast %90 : vector<16x1xf32> to vector<16x32xf32>
    %92 = arith.mulf %82, %91 : vector<16x32xf32>
    %93 = vector.broadcast %74 : vector<1x32xf32> to vector<16x32xf32>
    %94 = arith.mulf %92, %93 : vector<16x32xf32>
    %95 = vector.broadcast %76 : vector<1x32xf32> to vector<16x32xf32>
    %96 = arith.addf %94, %95 : vector<16x32xf32>
    %c0_47 = arith.constant 0 : index
    %c0_48 = arith.constant 0 : index
    %c0_49 = arith.constant 0 : index
    %97 = vector.load %arg12[%c0_47, %c0_48, %c0_49] : memref<2x32x32xf32, #tpu.memory_space<vmem>>, vector<1x32x32xf32>
    %98 = vector.shape_cast %97 : vector<1x32x32xf32> to vector<32x32xf32>
    %cst_50 = arith.constant dense<0.000000e+00> : vector<16x32xf32>
    %99 = tpu.matmul %96, %98, %cst_50 {dimension_numbers = #tpu.dot_dimension_numbers<[1], [0], [0], [1], [0, 0, 1, 1], [], []>} : vector<16x32xf32>, vector<32x32xf32>, vector<16x32xf32> -> vector<16x32xf32>
    %c0_51 = arith.constant 0 : index
    %c0_52 = arith.constant 0 : index
    %c0_53 = arith.constant 0 : index
    %100 = vector.load %arg13[%c0_51, %c0_52, %c0_53] : memref<2x1x32xf32, #tpu.memory_space<vmem>>, vector<1x1x32xf32>
    %101 = vector.shape_cast %100 : vector<1x1x32xf32> to vector<1x32xf32>
    %102 = vector.broadcast %101 : vector<1x32xf32> to vector<16x32xf32>
    %103 = arith.addf %99, %102 : vector<16x32xf32>
    %104 = vector.extract_strided_slice %103 {offsets = [0, 0], sizes = [16, 16], strides = [1, 1]} : vector<16x32xf32> to vector<16x16xf32>
    %105 = vector.extract_strided_slice %103 {offsets = [0, 16], sizes = [16, 16], strides = [1, 1]} : vector<16x32xf32> to vector<16x16xf32>
    %106 = tpu.concatenate %104, %105 in 0 : vector<16x16xf32>, vector<16x16xf32> -> vector<32x16xf32>
    %cst_54 = arith.constant 2.500000e-01 : f32
    %107 = vector.broadcast %cst_54 : f32 to vector<32x16xf32>
    %108 = arith.mulf %106, %107 : vector<32x16xf32>
    %cst_55 = arith.constant dense<0.000000e+00> : vector<32x64xf32>
    %109 = tpu.matmul %108, %22, %cst_55 {dimension_numbers = #tpu.dot_dimension_numbers<[1], [1], [0], [0], [0, 0, 1, 0], [], []>} : vector<32x16xf32>, vector<64x16xf32>, vector<32x64xf32> -> vector<32x64xf32>
    %110 = arith.addf %109, %14 : vector<32x64xf32>
    %cst_56 = arith.constant dense<0xFF800000> : vector<32xf32>
    %111 = vector.multi_reduction <maximumf>, %110, %cst_56 [1] : vector<32x64xf32> to vector<32xf32>
    %112 = vector.shape_cast %111 : vector<32xf32> to vector<32x1xf32>
    %113 = vector.broadcast %112 : vector<32x1xf32> to vector<32x64xf32>
    %114 = arith.subf %110, %113 : vector<32x64xf32>
    %115 = math.exp %114 : vector<32x64xf32>
    %cst_57 = arith.constant dense<0.000000e+00> : vector<32xf32>
    %116 = vector.multi_reduction <add>, %115, %cst_57 [1] : vector<32x64xf32> to vector<32xf32>
    %117 = vector.shape_cast %116 : vector<32xf32> to vector<32x1xf32>
    %118 = vector.broadcast %117 : vector<32x1xf32> to vector<32x64xf32>
    %119 = arith.divf %115, %118 : vector<32x64xf32>
    %cst_58 = arith.constant dense<0.000000e+00> : vector<32x16xf32>
    %120 = tpu.matmul %119, %25, %cst_58 {dimension_numbers = #tpu.dot_dimension_numbers<[1], [0], [0], [1], [0, 0, 1, 1], [], []>} : vector<32x64xf32>, vector<64x16xf32>, vector<32x16xf32> -> vector<32x16xf32>
    %121 = vector.extract_strided_slice %120 {offsets = [0, 0], sizes = [16, 16], strides = [1, 1]} : vector<32x16xf32> to vector<16x16xf32>
    %122 = vector.extract_strided_slice %120 {offsets = [16, 0], sizes = [16, 16], strides = [1, 1]} : vector<32x16xf32> to vector<16x16xf32>
    %123 = tpu.concatenate %121, %122 in 1 : vector<16x16xf32>, vector<16x16xf32> -> vector<16x32xf32>
    %c0_59 = arith.constant 0 : index
    %c0_60 = arith.constant 0 : index
    %c0_61 = arith.constant 0 : index
    %124 = vector.load %arg16[%c0_59, %c0_60, %c0_61] : memref<2x32x32xf32, #tpu.memory_space<vmem>>, vector<1x32x32xf32>
    %125 = vector.shape_cast %124 : vector<1x32x32xf32> to vector<32x32xf32>
    %cst_62 = arith.constant dense<0.000000e+00> : vector<16x32xf32>
    %126 = tpu.matmul %123, %125, %cst_62 {dimension_numbers = #tpu.dot_dimension_numbers<[1], [0], [0], [1], [0, 0, 1, 1], [], []>} : vector<16x32xf32>, vector<32x32xf32>, vector<16x32xf32> -> vector<16x32xf32>
    %c0_63 = arith.constant 0 : index
    %c0_64 = arith.constant 0 : index
    %c0_65 = arith.constant 0 : index
    %127 = vector.load %arg17[%c0_63, %c0_64, %c0_65] : memref<2x1x32xf32, #tpu.memory_space<vmem>>, vector<1x1x32xf32>
    %128 = vector.shape_cast %127 : vector<1x1x32xf32> to vector<1x32xf32>
    %129 = vector.broadcast %128 : vector<1x32xf32> to vector<16x32xf32>
    %130 = arith.addf %126, %129 : vector<16x32xf32>
    %131 = arith.addf %96, %130 : vector<16x32xf32>
    %c0_66 = arith.constant 0 : index
    %c0_67 = arith.constant 0 : index
    %c0_68 = arith.constant 0 : index
    %132 = vector.load %arg18[%c0_66, %c0_67, %c0_68] : memref<2x1x32xf32, #tpu.memory_space<vmem>>, vector<1x1x32xf32>
    %133 = vector.shape_cast %132 : vector<1x1x32xf32> to vector<1x32xf32>
    %c0_69 = arith.constant 0 : index
    %c0_70 = arith.constant 0 : index
    %c0_71 = arith.constant 0 : index
    %134 = vector.load %arg19[%c0_69, %c0_70, %c0_71] : memref<2x1x32xf32, #tpu.memory_space<vmem>>, vector<1x1x32xf32>
    %135 = vector.shape_cast %134 : vector<1x1x32xf32> to vector<1x32xf32>
    %cst_72 = arith.constant dense<0.000000e+00> : vector<16xf32>
    %136 = vector.multi_reduction <add>, %131, %cst_72 [1] : vector<16x32xf32> to vector<16xf32>
    %137 = vector.shape_cast %136 : vector<16xf32> to vector<16x1xf32>
    %cst_73 = arith.constant 3.200000e+01 : f32
    %138 = vector.broadcast %cst_73 : f32 to vector<16x1xf32>
    %139 = arith.divf %137, %138 : vector<16x1xf32>
    %140 = vector.broadcast %139 : vector<16x1xf32> to vector<16x32xf32>
    %141 = arith.subf %131, %140 : vector<16x32xf32>
    %142 = arith.mulf %141, %141 : vector<16x32xf32>
    %cst_74 = arith.constant dense<0.000000e+00> : vector<16xf32>
    %143 = vector.multi_reduction <add>, %142, %cst_74 [1] : vector<16x32xf32> to vector<16xf32>
    %144 = vector.shape_cast %143 : vector<16xf32> to vector<16x1xf32>
    %cst_75 = arith.constant 3.200000e+01 : f32
    %145 = vector.broadcast %cst_75 : f32 to vector<16x1xf32>
    %146 = arith.divf %144, %145 : vector<16x1xf32>
    %cst_76 = arith.constant 9.99999974E-6 : f32
    %147 = vector.broadcast %cst_76 : f32 to vector<16x1xf32>
    %148 = arith.addf %146, %147 : vector<16x1xf32>
    %149 = math.rsqrt %148 : vector<16x1xf32>
    %150 = vector.broadcast %149 : vector<16x1xf32> to vector<16x32xf32>
    %151 = arith.mulf %141, %150 : vector<16x32xf32>
    %152 = vector.broadcast %133 : vector<1x32xf32> to vector<16x32xf32>
    %153 = arith.mulf %151, %152 : vector<16x32xf32>
    %154 = vector.broadcast %135 : vector<1x32xf32> to vector<16x32xf32>
    %155 = arith.addf %153, %154 : vector<16x32xf32>
    %c0_77 = arith.constant 0 : index
    %c0_78 = arith.constant 0 : index
    %c0_79 = arith.constant 0 : index
    %156 = vector.load %arg20[%c0_77, %c0_78, %c0_79] : memref<2x32x64xf32, #tpu.memory_space<vmem>>, vector<1x32x64xf32>
    %157 = vector.shape_cast %156 : vector<1x32x64xf32> to vector<32x64xf32>
    %cst_80 = arith.constant dense<0.000000e+00> : vector<16x64xf32>
    %158 = tpu.matmul %155, %157, %cst_80 {dimension_numbers = #tpu.dot_dimension_numbers<[1], [0], [0], [1], [0, 0, 1, 1], [], []>} : vector<16x32xf32>, vector<32x64xf32>, vector<16x64xf32> -> vector<16x64xf32>
    %c0_81 = arith.constant 0 : index
    %c0_82 = arith.constant 0 : index
    %c0_83 = arith.constant 0 : index
    %159 = vector.load %arg21[%c0_81, %c0_82, %c0_83] : memref<2x1x64xf32, #tpu.memory_space<vmem>>, vector<1x1x64xf32>
    %160 = vector.shape_cast %159 : vector<1x1x64xf32> to vector<1x64xf32>
    %161 = vector.broadcast %160 : vector<1x64xf32> to vector<16x64xf32>
    %162 = arith.addf %158, %161 : vector<16x64xf32>
    %cst_84 = arith.constant 0.000000e+00 : f32
    %163 = vector.broadcast %cst_84 : f32 to vector<16x64xf32>
    %164 = arith.maximumf %162, %163 : vector<16x64xf32>
    %c0_85 = arith.constant 0 : index
    %c0_86 = arith.constant 0 : index
    %c0_87 = arith.constant 0 : index
    %165 = vector.load %arg22[%c0_85, %c0_86, %c0_87] : memref<2x64x32xf32, #tpu.memory_space<vmem>>, vector<1x64x32xf32>
    %166 = vector.shape_cast %165 : vector<1x64x32xf32> to vector<64x32xf32>
    %cst_88 = arith.constant dense<0.000000e+00> : vector<16x32xf32>
    %167 = tpu.matmul %164, %166, %cst_88 {dimension_numbers = #tpu.dot_dimension_numbers<[1], [0], [0], [1], [0, 0, 1, 1], [], []>} : vector<16x64xf32>, vector<64x32xf32>, vector<16x32xf32> -> vector<16x32xf32>
    %c0_89 = arith.constant 0 : index
    %c0_90 = arith.constant 0 : index
    %c0_91 = arith.constant 0 : index
    %168 = vector.load %arg23[%c0_89, %c0_90, %c0_91] : memref<2x1x32xf32, #tpu.memory_space<vmem>>, vector<1x1x32xf32>
    %169 = vector.shape_cast %168 : vector<1x1x32xf32> to vector<1x32xf32>
    %170 = vector.broadcast %169 : vector<1x32xf32> to vector<16x32xf32>
    %171 = arith.addf %167, %170 : vector<16x32xf32>
    %172 = arith.addf %155, %171 : vector<16x32xf32>
    %c0_92 = arith.constant 0 : index
    %c0_93 = arith.constant 0 : index
    %c0_94 = arith.constant 0 : index
    %173 = vector.load %arg24[%c0_92, %c0_93, %c0_94] : memref<2x1x32xf32, #tpu.memory_space<vmem>>, vector<1x1x32xf32>
    %174 = vector.shape_cast %173 : vector<1x1x32xf32> to vector<1x32xf32>
    %c0_95 = arith.constant 0 : index
    %c0_96 = arith.constant 0 : index
    %c0_97 = arith.constant 0 : index
    %175 = vector.load %arg25[%c0_95, %c0_96, %c0_97] : memref<2x1x32xf32, #tpu.memory_space<vmem>>, vector<1x1x32xf32>
    %176 = vector.shape_cast %175 : vector<1x1x32xf32> to vector<1x32xf32>
    %cst_98 = arith.constant dense<0.000000e+00> : vector<16xf32>
    %177 = vector.multi_reduction <add>, %172, %cst_98 [1] : vector<16x32xf32> to vector<16xf32>
    %178 = vector.shape_cast %177 : vector<16xf32> to vector<16x1xf32>
    %cst_99 = arith.constant 3.200000e+01 : f32
    %179 = vector.broadcast %cst_99 : f32 to vector<16x1xf32>
    %180 = arith.divf %178, %179 : vector<16x1xf32>
    %181 = vector.broadcast %180 : vector<16x1xf32> to vector<16x32xf32>
    %182 = arith.subf %172, %181 : vector<16x32xf32>
    %183 = arith.mulf %182, %182 : vector<16x32xf32>
    %cst_100 = arith.constant dense<0.000000e+00> : vector<16xf32>
    %184 = vector.multi_reduction <add>, %183, %cst_100 [1] : vector<16x32xf32> to vector<16xf32>
    %185 = vector.shape_cast %184 : vector<16xf32> to vector<16x1xf32>
    %cst_101 = arith.constant 3.200000e+01 : f32
    %186 = vector.broadcast %cst_101 : f32 to vector<16x1xf32>
    %187 = arith.divf %185, %186 : vector<16x1xf32>
    %cst_102 = arith.constant 9.99999974E-6 : f32
    %188 = vector.broadcast %cst_102 : f32 to vector<16x1xf32>
    %189 = arith.addf %187, %188 : vector<16x1xf32>
    %190 = math.rsqrt %189 : vector<16x1xf32>
    %191 = vector.broadcast %190 : vector<16x1xf32> to vector<16x32xf32>
    %192 = arith.mulf %182, %191 : vector<16x32xf32>
    %193 = vector.broadcast %174 : vector<1x32xf32> to vector<16x32xf32>
    %194 = arith.mulf %192, %193 : vector<16x32xf32>
    %195 = vector.broadcast %176 : vector<1x32xf32> to vector<16x32xf32>
    %196 = arith.addf %194, %195 : vector<16x32xf32>
    %c1 = arith.constant 1 : index
    %c0_103 = arith.constant 0 : index
    %c0_104 = arith.constant 0 : index
    %197 = vector.load %arg6[%c1, %c0_103, %c0_104] : memref<2x32x96xf32, #tpu.memory_space<vmem>>, vector<1x32x96xf32>
    %198 = vector.shape_cast %197 : vector<1x32x96xf32> to vector<32x96xf32>
    %cst_105 = arith.constant dense<0.000000e+00> : vector<16x96xf32>
    %199 = tpu.matmul %196, %198, %cst_105 {dimension_numbers = #tpu.dot_dimension_numbers<[1], [0], [0], [1], [0, 0, 1, 1], [], []>} : vector<16x32xf32>, vector<32x96xf32>, vector<16x96xf32> -> vector<16x96xf32>
    %c1_106 = arith.constant 1 : index
    %c0_107 = arith.constant 0 : index
    %c0_108 = arith.constant 0 : index
    %200 = vector.load %arg7[%c1_106, %c0_107, %c0_108] : memref<2x1x96xf32, #tpu.memory_space<vmem>>, vector<1x1x96xf32>
    %201 = vector.shape_cast %200 : vector<1x1x96xf32> to vector<1x96xf32>
    %202 = vector.broadcast %201 : vector<1x96xf32> to vector<16x96xf32>
    %203 = arith.addf %199, %202 : vector<16x96xf32>
    %204 = vector.extract_strided_slice %203 {offsets = [0, 0], sizes = [16, 16], strides = [1, 1]} : vector<16x96xf32> to vector<16x16xf32>
    %205 = vector.extract_strided_slice %203 {offsets = [0, 16], sizes = [16, 16], strides = [1, 1]} : vector<16x96xf32> to vector<16x16xf32>
    %206 = tpu.concatenate %204, %205 in 0 : vector<16x16xf32>, vector<16x16xf32> -> vector<32x16xf32>
    %cst_109 = arith.constant 2.500000e-01 : f32
    %207 = vector.broadcast %cst_109 : f32 to vector<32x16xf32>
    %208 = arith.mulf %206, %207 : vector<32x16xf32>
    %209 = vector.extract_strided_slice %203 {offsets = [0, 32], sizes = [16, 16], strides = [1, 1]} : vector<16x96xf32> to vector<16x16xf32>
    %210 = vector.extract_strided_slice %203 {offsets = [0, 48], sizes = [16, 16], strides = [1, 1]} : vector<16x96xf32> to vector<16x16xf32>
    %211 = tpu.concatenate %209, %210 in 0 : vector<16x16xf32>, vector<16x16xf32> -> vector<32x16xf32>
    %212 = vector.extract_strided_slice %203 {offsets = [0, 64], sizes = [16, 16], strides = [1, 1]} : vector<16x96xf32> to vector<16x16xf32>
    %213 = vector.extract_strided_slice %203 {offsets = [0, 80], sizes = [16, 16], strides = [1, 1]} : vector<16x96xf32> to vector<16x16xf32>
    %214 = tpu.concatenate %212, %213 in 0 : vector<16x16xf32>, vector<16x16xf32> -> vector<32x16xf32>
    %cst_110 = arith.constant dense<0.000000e+00> : vector<32x32xf32>
    %215 = tpu.matmul %208, %211, %cst_110 {dimension_numbers = #tpu.dot_dimension_numbers<[1], [1], [0], [0], [0, 0, 1, 0], [], []>} : vector<32x16xf32>, vector<32x16xf32>, vector<32x32xf32> -> vector<32x32xf32>
    %216 = arith.addf %215, %13 : vector<32x32xf32>
    %cst_111 = arith.constant dense<0xFF800000> : vector<32xf32>
    %217 = vector.multi_reduction <maximumf>, %216, %cst_111 [1] : vector<32x32xf32> to vector<32xf32>
    %218 = vector.shape_cast %217 : vector<32xf32> to vector<32x1xf32>
    %219 = vector.broadcast %218 : vector<32x1xf32> to vector<32x32xf32>
    %220 = arith.subf %216, %219 : vector<32x32xf32>
    %221 = math.exp %220 : vector<32x32xf32>
    %cst_112 = arith.constant dense<0.000000e+00> : vector<32xf32>
    %222 = vector.multi_reduction <add>, %221, %cst_112 [1] : vector<32x32xf32> to vector<32xf32>
    %223 = vector.shape_cast %222 : vector<32xf32> to vector<32x1xf32>
    %224 = vector.broadcast %223 : vector<32x1xf32> to vector<32x32xf32>
    %225 = arith.divf %221, %224 : vector<32x32xf32>
    %cst_113 = arith.constant dense<0.000000e+00> : vector<32x16xf32>
    %226 = tpu.matmul %225, %214, %cst_113 {dimension_numbers = #tpu.dot_dimension_numbers<[1], [0], [0], [1], [0, 0, 1, 1], [], []>} : vector<32x32xf32>, vector<32x16xf32>, vector<32x16xf32> -> vector<32x16xf32>
    %227 = vector.extract_strided_slice %226 {offsets = [0, 0], sizes = [16, 16], strides = [1, 1]} : vector<32x16xf32> to vector<16x16xf32>
    %228 = vector.extract_strided_slice %226 {offsets = [16, 0], sizes = [16, 16], strides = [1, 1]} : vector<32x16xf32> to vector<16x16xf32>
    %229 = tpu.concatenate %227, %228 in 1 : vector<16x16xf32>, vector<16x16xf32> -> vector<16x32xf32>
    %c1_114 = arith.constant 1 : index
    %c0_115 = arith.constant 0 : index
    %c0_116 = arith.constant 0 : index
    %230 = vector.load %arg8[%c1_114, %c0_115, %c0_116] : memref<2x32x32xf32, #tpu.memory_space<vmem>>, vector<1x32x32xf32>
    %231 = vector.shape_cast %230 : vector<1x32x32xf32> to vector<32x32xf32>
    %cst_117 = arith.constant dense<0.000000e+00> : vector<16x32xf32>
    %232 = tpu.matmul %229, %231, %cst_117 {dimension_numbers = #tpu.dot_dimension_numbers<[1], [0], [0], [1], [0, 0, 1, 1], [], []>} : vector<16x32xf32>, vector<32x32xf32>, vector<16x32xf32> -> vector<16x32xf32>
    %c1_118 = arith.constant 1 : index
    %c0_119 = arith.constant 0 : index
    %c0_120 = arith.constant 0 : index
    %233 = vector.load %arg9[%c1_118, %c0_119, %c0_120] : memref<2x1x32xf32, #tpu.memory_space<vmem>>, vector<1x1x32xf32>
    %234 = vector.shape_cast %233 : vector<1x1x32xf32> to vector<1x32xf32>
    %235 = vector.broadcast %234 : vector<1x32xf32> to vector<16x32xf32>
    %236 = arith.addf %232, %235 : vector<16x32xf32>
    %237 = arith.addf %236, %196 : vector<16x32xf32>
    %c1_121 = arith.constant 1 : index
    %c0_122 = arith.constant 0 : index
    %c0_123 = arith.constant 0 : index
    %238 = vector.load %arg10[%c1_121, %c0_122, %c0_123] : memref<2x1x32xf32, #tpu.memory_space<vmem>>, vector<1x1x32xf32>
    %239 = vector.shape_cast %238 : vector<1x1x32xf32> to vector<1x32xf32>
    %c1_124 = arith.constant 1 : index
    %c0_125 = arith.constant 0 : index
    %c0_126 = arith.constant 0 : index
    %240 = vector.load %arg11[%c1_124, %c0_125, %c0_126] : memref<2x1x32xf32, #tpu.memory_space<vmem>>, vector<1x1x32xf32>
    %241 = vector.shape_cast %240 : vector<1x1x32xf32> to vector<1x32xf32>
    %cst_127 = arith.constant dense<0.000000e+00> : vector<16xf32>
    %242 = vector.multi_reduction <add>, %237, %cst_127 [1] : vector<16x32xf32> to vector<16xf32>
    %243 = vector.shape_cast %242 : vector<16xf32> to vector<16x1xf32>
    %cst_128 = arith.constant 3.200000e+01 : f32
    %244 = vector.broadcast %cst_128 : f32 to vector<16x1xf32>
    %245 = arith.divf %243, %244 : vector<16x1xf32>
    %246 = vector.broadcast %245 : vector<16x1xf32> to vector<16x32xf32>
    %247 = arith.subf %237, %246 : vector<16x32xf32>
    %248 = arith.mulf %247, %247 : vector<16x32xf32>
    %cst_129 = arith.constant dense<0.000000e+00> : vector<16xf32>
    %249 = vector.multi_reduction <add>, %248, %cst_129 [1] : vector<16x32xf32> to vector<16xf32>
    %250 = vector.shape_cast %249 : vector<16xf32> to vector<16x1xf32>
    %cst_130 = arith.constant 3.200000e+01 : f32
    %251 = vector.broadcast %cst_130 : f32 to vector<16x1xf32>
    %252 = arith.divf %250, %251 : vector<16x1xf32>
    %cst_131 = arith.constant 9.99999974E-6 : f32
    %253 = vector.broadcast %cst_131 : f32 to vector<16x1xf32>
    %254 = arith.addf %252, %253 : vector<16x1xf32>
    %255 = math.rsqrt %254 : vector<16x1xf32>
    %256 = vector.broadcast %255 : vector<16x1xf32> to vector<16x32xf32>
    %257 = arith.mulf %247, %256 : vector<16x32xf32>
    %258 = vector.broadcast %239 : vector<1x32xf32> to vector<16x32xf32>
    %259 = arith.mulf %257, %258 : vector<16x32xf32>
    %260 = vector.broadcast %241 : vector<1x32xf32> to vector<16x32xf32>
    %261 = arith.addf %259, %260 : vector<16x32xf32>
    %c1_132 = arith.constant 1 : index
    %c0_133 = arith.constant 0 : index
    %c0_134 = arith.constant 0 : index
    %262 = vector.load %arg12[%c1_132, %c0_133, %c0_134] : memref<2x32x32xf32, #tpu.memory_space<vmem>>, vector<1x32x32xf32>
    %263 = vector.shape_cast %262 : vector<1x32x32xf32> to vector<32x32xf32>
    %cst_135 = arith.constant dense<0.000000e+00> : vector<16x32xf32>
    %264 = tpu.matmul %261, %263, %cst_135 {dimension_numbers = #tpu.dot_dimension_numbers<[1], [0], [0], [1], [0, 0, 1, 1], [], []>} : vector<16x32xf32>, vector<32x32xf32>, vector<16x32xf32> -> vector<16x32xf32>
    %c1_136 = arith.constant 1 : index
    %c0_137 = arith.constant 0 : index
    %c0_138 = arith.constant 0 : index
    %265 = vector.load %arg13[%c1_136, %c0_137, %c0_138] : memref<2x1x32xf32, #tpu.memory_space<vmem>>, vector<1x1x32xf32>
    %266 = vector.shape_cast %265 : vector<1x1x32xf32> to vector<1x32xf32>
    %267 = vector.broadcast %266 : vector<1x32xf32> to vector<16x32xf32>
    %268 = arith.addf %264, %267 : vector<16x32xf32>
    %269 = vector.extract_strided_slice %268 {offsets = [0, 0], sizes = [16, 16], strides = [1, 1]} : vector<16x32xf32> to vector<16x16xf32>
    %270 = vector.extract_strided_slice %268 {offsets = [0, 16], sizes = [16, 16], strides = [1, 1]} : vector<16x32xf32> to vector<16x16xf32>
    %271 = tpu.concatenate %269, %270 in 0 : vector<16x16xf32>, vector<16x16xf32> -> vector<32x16xf32>
    %cst_139 = arith.constant 2.500000e-01 : f32
    %272 = vector.broadcast %cst_139 : f32 to vector<32x16xf32>
    %273 = arith.mulf %271, %272 : vector<32x16xf32>
    %cst_140 = arith.constant dense<0.000000e+00> : vector<32x64xf32>
    %274 = tpu.matmul %273, %28, %cst_140 {dimension_numbers = #tpu.dot_dimension_numbers<[1], [1], [0], [0], [0, 0, 1, 0], [], []>} : vector<32x16xf32>, vector<64x16xf32>, vector<32x64xf32> -> vector<32x64xf32>
    %275 = arith.addf %274, %14 : vector<32x64xf32>
    %cst_141 = arith.constant dense<0xFF800000> : vector<32xf32>
    %276 = vector.multi_reduction <maximumf>, %275, %cst_141 [1] : vector<32x64xf32> to vector<32xf32>
    %277 = vector.shape_cast %276 : vector<32xf32> to vector<32x1xf32>
    %278 = vector.broadcast %277 : vector<32x1xf32> to vector<32x64xf32>
    %279 = arith.subf %275, %278 : vector<32x64xf32>
    %280 = math.exp %279 : vector<32x64xf32>
    %cst_142 = arith.constant dense<0.000000e+00> : vector<32xf32>
    %281 = vector.multi_reduction <add>, %280, %cst_142 [1] : vector<32x64xf32> to vector<32xf32>
    %282 = vector.shape_cast %281 : vector<32xf32> to vector<32x1xf32>
    %283 = vector.broadcast %282 : vector<32x1xf32> to vector<32x64xf32>
    %284 = arith.divf %280, %283 : vector<32x64xf32>
    %cst_143 = arith.constant dense<0.000000e+00> : vector<32x16xf32>
    %285 = tpu.matmul %284, %31, %cst_143 {dimension_numbers = #tpu.dot_dimension_numbers<[1], [0], [0], [1], [0, 0, 1, 1], [], []>} : vector<32x64xf32>, vector<64x16xf32>, vector<32x16xf32> -> vector<32x16xf32>
    %286 = vector.extract_strided_slice %285 {offsets = [0, 0], sizes = [16, 16], strides = [1, 1]} : vector<32x16xf32> to vector<16x16xf32>
    %287 = vector.extract_strided_slice %285 {offsets = [16, 0], sizes = [16, 16], strides = [1, 1]} : vector<32x16xf32> to vector<16x16xf32>
    %288 = tpu.concatenate %286, %287 in 1 : vector<16x16xf32>, vector<16x16xf32> -> vector<16x32xf32>
    %c1_144 = arith.constant 1 : index
    %c0_145 = arith.constant 0 : index
    %c0_146 = arith.constant 0 : index
    %289 = vector.load %arg16[%c1_144, %c0_145, %c0_146] : memref<2x32x32xf32, #tpu.memory_space<vmem>>, vector<1x32x32xf32>
    %290 = vector.shape_cast %289 : vector<1x32x32xf32> to vector<32x32xf32>
    %cst_147 = arith.constant dense<0.000000e+00> : vector<16x32xf32>
    %291 = tpu.matmul %288, %290, %cst_147 {dimension_numbers = #tpu.dot_dimension_numbers<[1], [0], [0], [1], [0, 0, 1, 1], [], []>} : vector<16x32xf32>, vector<32x32xf32>, vector<16x32xf32> -> vector<16x32xf32>
    %c1_148 = arith.constant 1 : index
    %c0_149 = arith.constant 0 : index
    %c0_150 = arith.constant 0 : index
    %292 = vector.load %arg17[%c1_148, %c0_149, %c0_150] : memref<2x1x32xf32, #tpu.memory_space<vmem>>, vector<1x1x32xf32>
    %293 = vector.shape_cast %292 : vector<1x1x32xf32> to vector<1x32xf32>
    %294 = vector.broadcast %293 : vector<1x32xf32> to vector<16x32xf32>
    %295 = arith.addf %291, %294 : vector<16x32xf32>
    %296 = arith.addf %261, %295 : vector<16x32xf32>
    %c1_151 = arith.constant 1 : index
    %c0_152 = arith.constant 0 : index
    %c0_153 = arith.constant 0 : index
    %297 = vector.load %arg18[%c1_151, %c0_152, %c0_153] : memref<2x1x32xf32, #tpu.memory_space<vmem>>, vector<1x1x32xf32>
    %298 = vector.shape_cast %297 : vector<1x1x32xf32> to vector<1x32xf32>
    %c1_154 = arith.constant 1 : index
    %c0_155 = arith.constant 0 : index
    %c0_156 = arith.constant 0 : index
    %299 = vector.load %arg19[%c1_154, %c0_155, %c0_156] : memref<2x1x32xf32, #tpu.memory_space<vmem>>, vector<1x1x32xf32>
    %300 = vector.shape_cast %299 : vector<1x1x32xf32> to vector<1x32xf32>
    %cst_157 = arith.constant dense<0.000000e+00> : vector<16xf32>
    %301 = vector.multi_reduction <add>, %296, %cst_157 [1] : vector<16x32xf32> to vector<16xf32>
    %302 = vector.shape_cast %301 : vector<16xf32> to vector<16x1xf32>
    %cst_158 = arith.constant 3.200000e+01 : f32
    %303 = vector.broadcast %cst_158 : f32 to vector<16x1xf32>
    %304 = arith.divf %302, %303 : vector<16x1xf32>
    %305 = vector.broadcast %304 : vector<16x1xf32> to vector<16x32xf32>
    %306 = arith.subf %296, %305 : vector<16x32xf32>
    %307 = arith.mulf %306, %306 : vector<16x32xf32>
    %cst_159 = arith.constant dense<0.000000e+00> : vector<16xf32>
    %308 = vector.multi_reduction <add>, %307, %cst_159 [1] : vector<16x32xf32> to vector<16xf32>
    %309 = vector.shape_cast %308 : vector<16xf32> to vector<16x1xf32>
    %cst_160 = arith.constant 3.200000e+01 : f32
    %310 = vector.broadcast %cst_160 : f32 to vector<16x1xf32>
    %311 = arith.divf %309, %310 : vector<16x1xf32>
    %cst_161 = arith.constant 9.99999974E-6 : f32
    %312 = vector.broadcast %cst_161 : f32 to vector<16x1xf32>
    %313 = arith.addf %311, %312 : vector<16x1xf32>
    %314 = math.rsqrt %313 : vector<16x1xf32>
    %315 = vector.broadcast %314 : vector<16x1xf32> to vector<16x32xf32>
    %316 = arith.mulf %306, %315 : vector<16x32xf32>
    %317 = vector.broadcast %298 : vector<1x32xf32> to vector<16x32xf32>
    %318 = arith.mulf %316, %317 : vector<16x32xf32>
    %319 = vector.broadcast %300 : vector<1x32xf32> to vector<16x32xf32>
    %320 = arith.addf %318, %319 : vector<16x32xf32>
    %c1_162 = arith.constant 1 : index
    %c0_163 = arith.constant 0 : index
    %c0_164 = arith.constant 0 : index
    %321 = vector.load %arg20[%c1_162, %c0_163, %c0_164] : memref<2x32x64xf32, #tpu.memory_space<vmem>>, vector<1x32x64xf32>
    %322 = vector.shape_cast %321 : vector<1x32x64xf32> to vector<32x64xf32>
    %cst_165 = arith.constant dense<0.000000e+00> : vector<16x64xf32>
    %323 = tpu.matmul %320, %322, %cst_165 {dimension_numbers = #tpu.dot_dimension_numbers<[1], [0], [0], [1], [0, 0, 1, 1], [], []>} : vector<16x32xf32>, vector<32x64xf32>, vector<16x64xf32> -> vector<16x64xf32>
    %c1_166 = arith.constant 1 : index
    %c0_167 = arith.constant 0 : index
    %c0_168 = arith.constant 0 : index
    %324 = vector.load %arg21[%c1_166, %c0_167, %c0_168] : memref<2x1x64xf32, #tpu.memory_space<vmem>>, vector<1x1x64xf32>
    %325 = vector.shape_cast %324 : vector<1x1x64xf32> to vector<1x64xf32>
    %326 = vector.broadcast %325 : vector<1x64xf32> to vector<16x64xf32>
    %327 = arith.addf %323, %326 : vector<16x64xf32>
    %cst_169 = arith.constant 0.000000e+00 : f32
    %328 = vector.broadcast %cst_169 : f32 to vector<16x64xf32>
    %329 = arith.maximumf %327, %328 : vector<16x64xf32>
    %c1_170 = arith.constant 1 : index
    %c0_171 = arith.constant 0 : index
    %c0_172 = arith.constant 0 : index
    %330 = vector.load %arg22[%c1_170, %c0_171, %c0_172] : memref<2x64x32xf32, #tpu.memory_space<vmem>>, vector<1x64x32xf32>
    %331 = vector.shape_cast %330 : vector<1x64x32xf32> to vector<64x32xf32>
    %cst_173 = arith.constant dense<0.000000e+00> : vector<16x32xf32>
    %332 = tpu.matmul %329, %331, %cst_173 {dimension_numbers = #tpu.dot_dimension_numbers<[1], [0], [0], [1], [0, 0, 1, 1], [], []>} : vector<16x64xf32>, vector<64x32xf32>, vector<16x32xf32> -> vector<16x32xf32>
    %c1_174 = arith.constant 1 : index
    %c0_175 = arith.constant 0 : index
    %c0_176 = arith.constant 0 : index
    %333 = vector.load %arg23[%c1_174, %c0_175, %c0_176] : memref<2x1x32xf32, #tpu.memory_space<vmem>>, vector<1x1x32xf32>
    %334 = vector.shape_cast %333 : vector<1x1x32xf32> to vector<1x32xf32>
    %335 = vector.broadcast %334 : vector<1x32xf32> to vector<16x32xf32>
    %336 = arith.addf %332, %335 : vector<16x32xf32>
    %337 = arith.addf %320, %336 : vector<16x32xf32>
    %c1_177 = arith.constant 1 : index
    %c0_178 = arith.constant 0 : index
    %c0_179 = arith.constant 0 : index
    %338 = vector.load %arg24[%c1_177, %c0_178, %c0_179] : memref<2x1x32xf32, #tpu.memory_space<vmem>>, vector<1x1x32xf32>
    %339 = vector.shape_cast %338 : vector<1x1x32xf32> to vector<1x32xf32>
    %c1_180 = arith.constant 1 : index
    %c0_181 = arith.constant 0 : index
    %c0_182 = arith.constant 0 : index
    %340 = vector.load %arg25[%c1_180, %c0_181, %c0_182] : memref<2x1x32xf32, #tpu.memory_space<vmem>>, vector<1x1x32xf32>
    %341 = vector.shape_cast %340 : vector<1x1x32xf32> to vector<1x32xf32>
    %cst_183 = arith.constant dense<0.000000e+00> : vector<16xf32>
    %342 = vector.multi_reduction <add>, %337, %cst_183 [1] : vector<16x32xf32> to vector<16xf32>
    %343 = vector.shape_cast %342 : vector<16xf32> to vector<16x1xf32>
    %cst_184 = arith.constant 3.200000e+01 : f32
    %344 = vector.broadcast %cst_184 : f32 to vector<16x1xf32>
    %345 = arith.divf %343, %344 : vector<16x1xf32>
    %346 = vector.broadcast %345 : vector<16x1xf32> to vector<16x32xf32>
    %347 = arith.subf %337, %346 : vector<16x32xf32>
    %348 = arith.mulf %347, %347 : vector<16x32xf32>
    %cst_185 = arith.constant dense<0.000000e+00> : vector<16xf32>
    %349 = vector.multi_reduction <add>, %348, %cst_185 [1] : vector<16x32xf32> to vector<16xf32>
    %350 = vector.shape_cast %349 : vector<16xf32> to vector<16x1xf32>
    %cst_186 = arith.constant 3.200000e+01 : f32
    %351 = vector.broadcast %cst_186 : f32 to vector<16x1xf32>
    %352 = arith.divf %350, %351 : vector<16x1xf32>
    %cst_187 = arith.constant 9.99999974E-6 : f32
    %353 = vector.broadcast %cst_187 : f32 to vector<16x1xf32>
    %354 = arith.addf %352, %353 : vector<16x1xf32>
    %355 = math.rsqrt %354 : vector<16x1xf32>
    %356 = vector.broadcast %355 : vector<16x1xf32> to vector<16x32xf32>
    %357 = arith.mulf %347, %356 : vector<16x32xf32>
    %358 = vector.broadcast %339 : vector<1x32xf32> to vector<16x32xf32>
    %359 = arith.mulf %357, %358 : vector<16x32xf32>
    %360 = vector.broadcast %341 : vector<1x32xf32> to vector<16x32xf32>
    %361 = arith.addf %359, %360 : vector<16x32xf32>
    %c0_188 = arith.constant 0 : index
    %c0_189 = arith.constant 0 : index
    %362 = vector.load %arg26[%c0_188, %c0_189] : memref<16x32xf32, #tpu.memory_space<vmem>>, vector<16x32xf32>
    tpu.vector_store %arg26[%c0_188, %c0_189], %361 {strides = array<i32>} : memref<16x32xf32, #tpu.memory_space<vmem>>, vector<16x32xf32>,
    return
  }
}

</mosaic_0001>

<bundles_post_ra>
// kernel: decoder_forward.1
= control target key start
LH: loop header
LB: loop body
LE: loop exit
PB: predicated region body
PF: predicated region fallthrough
CT: control target
= control target key end

     0   :  { %s5130_s0 = inlined_call_operand.vmem [shape: s32[16,1], index: 0, kind: input, shape index: {}]   ;;  %s5131_s1 = inlined_call_operand.vmem [shape: f32[128,32], index: 1, kind: input, shape index: {}]   ;;  %s5132_s2 = inlined_call_operand.vmem [shape: f32[16,32], index: 2, kind: input, shape index: {}]   ;;  %s5133_s3 = inlined_call_operand.vmem [shape: f32[32,32], index: 3, kind: input, shape index: {}]   ;;  %s5134_s4 = inlined_call_operand.vmem [shape: f32[32,32], index: 4, kind: input, shape index: {}]   ;;  %s5135_s5 = inlined_call_operand.vmem [shape: f32[32,64], index: 5, kind: input, shape index: {}]   ;;  %s5136_s6 = inlined_call_operand.vmem [shape: f32[2,32,96], index: 6, kind: input, shape index: {}]   ;;  %s5137_s7 = inlined_call_operand.vmem [shape: f32[2,1,96], index: 7, kind: input, shape index: {}]   ;;  %s5138_s8 = inlined_call_operand.vmem [shape: f32[2,32,32], index: 8, kind: input, shape index: {}]   ;;  %s5139_s9 = inlined_call_operand.vmem [shape: f32[2,1,32], index: 9, kind: input, shape index: {}]   ;;  %s5140_s10 = inlined_call_operand.vmem [shape: f32[2,1,32], index: 10, kind: input, shape index: {}]   ;;  %s5141_s11 = inlined_call_operand.vmem [shape: f32[2,1,32], index: 11, kind: input, shape index: {}]   ;;  %s5142_s12 = inlined_call_operand.vmem [shape: f32[2,32,32], index: 12, kind: input, shape index: {}]   ;;  %s5143_s13 = inlined_call_operand.hbm [shape: f32[2,1,32], index: 13, kind: input, shape index: {}]   ;;  %s5144_s14 = inlined_call_operand.vmem [shape: f32[32,128], index: 14, kind: input, shape index: {}]   ;;  %s5145_s15 = inlined_call_operand.vmem [shape: f32[1,128], index: 15, kind: input, shape index: {}]   ;;  %s5146_s16 = inlined_call_operand.vmem [shape: f32[2,32,32], index: 16, kind: input, shape index: {}]   ;;  %s5147_s17 = inlined_call_operand.hbm [shape: f32[2,1,32], index: 17, kind: input, shape index: {}]   ;;  %s5148_s18 = inlined_call_operand.vmem [shape: f32[2,1,32], index: 18, kind: input, shape index: {}]   ;;  %s5149_s19 = inlined_call_operand.vmem [shape: f32[2,1,32], index: 19, kind: input, shape index: {}]   ;;  %s5150_s20 = inlined_call_operand.vmem [shape: f32[2,32,64], index: 20, kind: input, shape index: {}]   ;;  %s5151_s21 = inlined_call_operand.hbm [shape: f32[2,1,64], index: 21, kind: input, shape index: {}]   ;;  %s5152_s22 = inlined_call_operand.vmem [shape: f32[2,64,32], index: 22, kind: input, shape index: {}]   ;;  %s5153_s23 = inlined_call_operand.vmem [shape: f32[2,1,32], index: 23, kind: input, shape index: {}]   ;;  %s5154_s24 = inlined_call_operand.vmem [shape: f32[2,1,32], index: 24, kind: input, shape index: {}]   ;;  %s5155_s25 = inlined_call_operand.vmem [shape: f32[2,1,32], index: 25, kind: input, shape index: {}]   ;;  %s5156_s26 = inlined_call_operand.hbm [shape: f32[16,32], index: 26, kind: output, shape index: {}]  }
   0x1   :  { %5168 = sst [smem:[#allocation12_spill]] %s5130_s0 }
   0x2   :  { %5169 = sst [smem:[#allocation13_spill]] %s5131_s1 }
   0x3   :  { %5170 = sst [smem:[#allocation14_spill]] %s5132_s2 }
   0x4   :  { %5171 = sst [smem:[#allocation15_spill]] %s5133_s3 }
   0x5   :  { %5172 = sst [smem:[#allocation16_spill]] %s5134_s4 }
   0x6   :  { %5173 = sst [smem:[#allocation17_spill]] %s5135_s5 }
   0x7   :  { %5174 = sst [smem:[#allocation18_spill]] %s5136_s6 }
   0x8   :  { %5175 = sst [smem:[#allocation19_spill]] %s5137_s7 }
   0x9   :  { %5176 = sst [smem:[#allocation20_spill]] %s5138_s8 }
   0xa   :  { %5177 = sst [smem:[#allocation21_spill]] %s5139_s9 }
   0xb   :  { %5178 = sst [smem:[#allocation22_spill]] %s5140_s10 }
   0xc   :  { %31 = vsyncpa [#allocation3], 0 }
   0xd   :  { %32 = vsyncpa [#allocation6], 0 }
   0xe   :  { %33 = vsyncpa [#allocation4], 0  ;;  %s4252_s27 = smov [#allocation5]   ;;  %s4253_s7 = smov [#allocation2]  }
   0xf   :  { %s83_s3 = sshll.u32 %s4252_s27, 4  ;;  %s65_s28 = sshll.u32 %s4253_s7, 4  ;;  %s84_s3 = int_to_ptr.vmem [resolvable:$true] %s83_s3  ;;  %s4401_s28 = int_to_ptr.vmem [resolvable:$true] %s65_s28 }
  0x10   :  { %s4158_s29 = scalar_lea.hbm %s5147_s17, 32 }
  0x11   :  { %p4159_p0 = scmp.ne.s32.totalorder %s5147_s17, %s4158_s29  ;;  %p4162_p1 = scmp.lt.u32.totalorder %s4158_s29, %s5147_s17 }
  0x13   :  { %p4164_p2 = pnand %p4162_p1, %p4159_p0 }
  0x15   :  { %4167 = shalt.err (!%p4164_p2)
}
  0x16   :  { %s4168_s5 = scalar_lea.vmem %s84_s3, 32  ;;  %p4173_p4 = scmp.lt.s32.totalorder %s84_s3, %s84_s3 }
  0x17   :  { %p4169_p3 = scmp.ne.s32.totalorder %s84_s3, %s4168_s5  ;;  %p4174_p5 = scmp.lt.s32.totalorder %s4168_s5, %s4168_s5 }
  0x19   :  { %p4175_p6 = por %p4174_p5, %p4173_p4 }
  0x1b   :  { %p4176_p7 = pnand %p4175_p6, %p4169_p3 }
  0x1d   :  { %4179 = shalt.err (!%p4176_p7)
}
  0x1e   :  { %s4254_s10 = smov 16   ;;  %s4255_s6 = smov 1  }
  0x1f   :  { %89 = dma.hbm_to_vmem [thread:$0]  %s5147_s17, 32, %s84_s3, [#allocation6], %s4254_s10, %s4254_s10, %s4255_s6  }
  0x20   :  { %s4180_s4 = scalar_lea.hbm %s5143_s13, 32 }
  0x21   :  { %p4181_p8 = scmp.ne.s32.totalorder %s5143_s13, %s4180_s4  ;;  %p4184_p9 = scmp.lt.u32.totalorder %s4180_s4, %s5143_s13 }
  0x23   :  { %p4186_p10 = pnand %p4184_p9, %p4181_p8 }
  0x25   :  { %4189 = shalt.err (!%p4186_p10)
}
  0x26   :  { %s4190_s2 = scalar_lea.vmem %s4401_s28, 32  ;;  %p4195_p12 = scmp.lt.s32.totalorder %s4401_s28, %s4401_s28 }
  0x27   :  { %p4191_p11 = scmp.ne.s32.totalorder %s4401_s28, %s4190_s2  ;;  %p4196_p13 = scmp.lt.s32.totalorder %s4190_s2, %s4190_s2 }
  0x29   :  { %p4197_p0 = por %p4196_p13, %p4195_p12 }
  0x2b   :  { %p4198_p1 = pnand %p4197_p0, %p4191_p11 }
  0x2d   :  { %4201 = shalt.err (!%p4198_p1)
}
  0x2e   :  { %71 = dma.hbm_to_vmem [thread:$0]  %s5143_s13, 32, %s4401_s28, [#allocation3], %s4254_s10, %s4254_s10, %s4255_s6  }
  0x2f   :  { %s4256_s5 = smov [#allocation7]   ;;  %s4202_s8 = scalar_lea.hbm %s5151_s21, 32 }
  0x30   :  { %s101_s1 = sshll.u32 %s4256_s5, 4  ;;  %p4203_p2 = scmp.ne.s32.totalorder %s5151_s21, %s4202_s8  ;;  %s102_s1 = int_to_ptr.vmem [resolvable:$true] %s101_s1 }
  0x31   :  { %p4206_p3 = scmp.lt.u32.totalorder %s4202_s8, %s5151_s21 }
  0x33   :  { %p4208_p4 = pnand %p4206_p3, %p4203_p2 }
  0x35   :  { %4211 = shalt.err (!%p4208_p4)
}
  0x36   :  { %s4212_s30 = scalar_lea.vmem %s102_s1, 32  ;;  %p4217_p6 = scmp.lt.s32.totalorder %s102_s1, %s102_s1 }
  0x37   :  { %p4213_p5 = scmp.ne.s32.totalorder %s102_s1, %s4212_s30  ;;  %p4218_p7 = scmp.lt.s32.totalorder %s4212_s30, %s4212_s30 }
  0x39   :  { %p4219_p8 = por %p4218_p7, %p4217_p6 }
  0x3b   :  { %p4220_p9 = pnand %p4219_p8, %p4213_p5 }
  0x3d   :  { %4223 = shalt.err (!%p4220_p9)
}
  0x3e   :  { %107 = dma.hbm_to_vmem [thread:$0]  %s5151_s21, 32, %s102_s1, [#allocation6], %s4254_s10, %s4254_s10, %s4255_s6  }
  0x3f   :  { %4246 = dma.done.wait [#allocation3], 32  }
  0x40   :  { %4247 = vsyncadd [#allocation3], 4294967264 }
  0x41   :  { %4248 = dma.done.wait [#allocation6], 64  }
  0x42   :  { %4249 = vsyncadd [#allocation6], 4294967232  ;;  %v4257_v0 = vmov 0   ;;  %s5179_s3 = sld [smem:[#allocation12_spill]]  ;;  %s5180_s7 = sld [smem:[#allocation13_spill]]  ;;  %v250_v13 = vld [vmem:[%s5144_s14] sm:$0xff]  ;;  %v127_v38 = vlaneseq }
  0x43   :  { %3959 = vset.pattern.permute.xlu0 %v4257_v0  ;;  %v251_v14 = vld [vmem:[%s5144_s14 + $0x8] sm:$0xff]  ;;  %v252_v15 = vld [vmem:[%s5144_s14 + $0x10] sm:$0xff]  ;;  %vm261_vm0 = vcmask 261120   ;;  %v253_v18 = vld [vmem:[%s5144_s14 + $0x18] sm:$0xff]  ;;  %s5181_s28 = sld [smem:[#allocation15_spill]]  ;;  %s5182_s5 = sld [smem:[#allocation18_spill]] }
  0x44   :  { %v3705_v17 = vpack.c.bf16 %v251_v14, %v250_v13  ;;  %v3709_v20 = vpack.c.bf16 %v253_v18, %v252_v15  ;;  %v128_v39 = vand.u32 127, %v127_v38  ;;  %v4258_v41 = vmov 1.0   ;;  %s5183_s17 = sld [smem:[#allocation14_spill]]  ;;  %v3000_v58 = vld [vmem:[%s5145_s15] ss:$0 sm:$0xff]  ;;  %s5184_s21 = sld [smem:[#allocation19_spill]] }
  0x45   :  { %vm483_vm3 = vcmask 130048   ;;  %s4259_s15 = smov 112   ;;  %s4260_s6 = smov 96   ;;  %vm1108_vm5 = vcmask 523264  }
  0x46   :  { %3706 = vmatprep.subr.bf16.mxu1 %v3705_v17  ;;  %vm4584_vm4 = vmpackc.low %vm483_vm3, %vm483_vm3  ;;  %s5187_s29 = sld [smem:[#allocation20_spill]]  ;;  %s4261_s9 = smov 64  }
  0x47   :  { %3708 = vmatpush3.bf16.msra.mxu1 %v3705_v17  ;;  %s5189_s2 = sld [smem:[#allocation21_spill]]  ;;  %s5190_s30 = sld [smem:[#allocation22_spill]] }
  0x48   :  { %v125_v1 = vld [vmem:[%s5179_s3] sm:$0xff]  ;;  %v142_v3 = vld [vmem:[%s5180_s7 + $0x8] sm:$0xff]  ;;  %v143_v4 = vld [vmem:[%s5180_s7 + $0x10] sm:$0xff]  ;;  %3710 = vmatprep.subr.bf16.mxu1 %v3709_v20  ;;  %s4263_s14 = smov [#allocation8]  }
  0x49   :  { %v141_v2 = vld [vmem:[%s5180_s7] sm:$0xff]  ;;  %130 = vperm.xlu0 %3959, %v125_v1   ;;  %v144_v5 = vld [vmem:[%s5180_s7 + $0x18] sm:$0xff]  ;;  %v126_v6 = vld [vmem:[%s5179_s3 + $0x8] sm:$0xff]  ;;  %s2983_s8 = sshll.u32 %s4263_s14, 4  ;;  %s2984_s8 = int_to_ptr.vmem [resolvable:$true] %s2983_s8 }
  0x4a   :  { %v3673_v7 = vpack.c.bf16 %v142_v3, %v141_v2  ;;  %v3677_v8 = vpack.c.bf16 %v144_v5, %v143_v4  ;;  %v145_v9 = vld [vmem:[%s5180_s7 + $0x20] sm:$0xff]  ;;  %v146_v10 = vld [vmem:[%s5180_s7 + $0x28] sm:$0xff]  ;;  %v147_v11 = vld [vmem:[%s5180_s7 + $0x30] sm:$0xff]  ;;  %p4229_p11 = scmp.lt.s32.totalorder %s2984_s8, %s2984_s8 }
  0x4b   :  { %v3681_v12 = vpack.c.bf16 %v146_v10, %v145_v9  ;;  %v148_v16 = vld [vmem:[%s5180_s7 + $0x38] sm:$0xff]  ;;  %v238_v19 = vld [vmem:[%s5181_s28] sm:$0xff]  ;;  %v372_v22 = vld [vmem:[%s5182_s5 + $0x8] sm:$0xff]  ;;  %3712 = vmatpush3.bf16.msra.mxu1 %v3709_v20 }
  0x4c   :  { %3674 = vmatprep.subr.bf16.mxu0 %v3673_v7  ;;  %3375 = vmatprep.mubr.msk.f32.mxu1 %vm261_vm0, %v238_v19  ;;  %v371_v21 = vld [vmem:[%s5182_s5] sm:$0xff]  ;;  %v3685_v23 = vpack.c.bf16 %v148_v16, %v147_v11  ;;  %v150_v25 = vld [vmem:[%s5180_s7 + $0x48] sm:$0xff]  ;;  %v151_v29 = vld [vmem:[%s5180_s7 + $0x50] sm:$0xff] }
  0x4d   :  { %133 = vperm.xlu0 %3959, %v126_v6   ;;  %3676 = vmatpush3.bf16.msra.mxu0 %v3673_v7  ;;  %v149_v24 = vld [vmem:[%s5180_s7 + $0x40] sm:$0xff]  ;;  %v3713_v26 = vpack.c.bf16 %v372_v22, %v371_v21  ;;  %v239_v28 = vld [vmem:[%s5181_s28 + $0x8] sm:$0xff]  ;;  %v152_v30 = vld [vmem:[%s5180_s7 + $0x58] sm:$0xff] }
  0x4e   :  { %3678 = vmatprep.subr.bf16.mxu0 %v3677_v8  ;;  %v3689_v27 = vpack.c.bf16 %v150_v25, %v149_v24  ;;  %3376 = vmatmul.mubr.msk.f32.vlgmr.msra.gmra.mrb[0].mxu1 %vm261_vm0, %v239_v28  ;;  %v3693_v31 = vpack.c.bf16 %v152_v30, %v151_v29  ;;  %v153_v32 = vld [vmem:[%s5180_s7 + $0x60] sm:$0xff]  ;;  %v154_v33 = vld [vmem:[%s5180_s7 + $0x68] sm:$0xff]  ;;  %v155_v35 = vld [vmem:[%s5180_s7 + $0x70] sm:$0xff] }
  0x4f   :  { %3714 = vmatprep.subr.bf16.mxu1 %v3713_v26  ;;  %v3697_v34 = vpack.c.bf16 %v154_v33, %v153_v32  ;;  %v156_v36 = vld [vmem:[%s5180_s7 + $0x78] sm:$0xff]  ;;  %v240_v43 = vld [vmem:[%s5181_s28 + $0x10] sm:$0xff]  ;;  %v234_v53 = vld [vmem:[%s5183_s17] sm:$0xff] }
  0x50   :  { %3716 = vmatpush3.bf16.msra.mxu1 %v3713_v26  ;;  %v3701_v37 = vpack.c.bf16 %v156_v36, %v155_v35  ;;  %v373_v44 = vld [vmem:[%s5182_s5 + $0x10] sm:$0xff]  ;;  %v374_v45 = vld [vmem:[%s5182_s5 + $0x18] sm:$0xff]  ;;  %3378 = vmatprep.mubr.msk.f32.mxu1 %vm261_vm0, %v240_v43  ;;  %v235_v54 = vld [vmem:[%s5183_s17 + $0x8] sm:$0xff] }
  0x51   :  { %3680 = vmatpush3.bf16.msra.mxu0 %v3677_v8  ;;  %v241_v46 = vld [vmem:[%s5181_s28 + $0x18] sm:$0xff]  ;;  %v3717_v47 = vpack.c.bf16 %v374_v45, %v373_v44  ;;  %v3005_v5 = vld [vmem:[%s5184_s21] ss:$0 sm:$0xff]  ;;  %v753_v22 = vld [vmem:[%s5187_s29 + $0x8] sm:$0xff]  ;;  %s5188_s28 = sld [smem:[#allocation16_spill]] }
  0x52   :  { %3682 = vmatprep.subr.bf16.mxu0 %v3681_v12  ;;  %3379 = vmatmul.mubr.msk.f32.gmra.mrb[2].mxu1 %vm261_vm0, %v241_v46  ;;  %v752_v21 = vld [vmem:[%s5187_s29] sm:$0xff]  ;;  %v755_v28 = vld [vmem:[%s5187_s29 + $0x18] sm:$0xff] }
  0x53   :  { %3718 = vmatprep.subr.bf16.mxu1 %v3717_v47  ;;  %v3741_v26 = vpack.c.bf16 %v753_v22, %v752_v21 }
  0x54   :  { %3720 = vmatpush3.bf16.msra.mxu1 %v3717_v47 }
  0x55   :  { %3684 = vmatpush3.bf16.msra.mxu0 %v3681_v12 }
  0x56   :  { %3686 = vmatprep.subr.bf16.mxu0 %v3685_v23 }
  0x57   :  { %v4621_v33 = vld [vmem:[%s5188_s28 + $0x8] sm:$0xff]  ;;  %v4640_v43 = vld [vmem:[%s5188_s28 + $0x18] sm:$0xff] }
  0x59   :  { %3688 = vmatpush3.bf16.msra.mxu0 %v3685_v23 }
  0x5a   :  { %3690 = vmatprep.subr.bf16.mxu0 %v3689_v27 }
  0x5d   :  { %3692 = vmatpush3.bf16.msra.mxu0 %v3689_v27  ;;  %v754_v27 = vld [vmem:[%s5187_s29 + $0x10] sm:$0xff] }
  0x5e   :  { %3694 = vmatprep.subr.bf16.mxu0 %v3693_v31  ;;  %v3745_v30 = vpack.c.bf16 %v755_v28, %v754_v27 }
  0x61   :  { %3696 = vmatpush3.bf16.msra.mxu0 %v3693_v31 }
  0x62   :  { %3698 = vmatprep.subr.bf16.mxu0 %v3697_v34 }
  0x65   :  { %3700 = vmatpush3.bf16.msra.mxu0 %v3697_v34  ;;  %v4626_v34 = vld [vmem:[%s5188_s28] sm:$0xff] }
  0x66   :  { %3702 = vmatprep.subr.bf16.mxu0 %v3701_v37 }
  0x69   :  { %3704 = vmatpush3.bf16.msra.mxu0 %v3701_v37 }
  0xc8   :  { %v131_v40 = vpop.permute.xlu0 %130 }
  0xc9   :  { %vm135_vm1 = vcmp.eq.s32.totalorder %v131_v40, %v128_v39  ;;  %v4634_v40 = vld [vmem:[%s5188_s28 + $0x10] sm:$0xff]  ;;  %s5191_s28 = sld [smem:[#allocation17_spill]] }
  0xca   :  { %3364 = vmatprep.mubr.msk.f32.mxu0 %vm135_vm1, %v4258_v41 }
  0xcc   :  { %v134_v42 = vpop.permute.xlu0 %133 }
  0xcd   :  { %vm136_vm2 = vcmp.eq.s32.totalorder %v134_v42, %v128_v39 }
  0xce   :  { %3365 = vmatmul.mubr.msk.f32.vlgmr.msra.gmra.mrb[0].mxu0 %vm136_vm2, %v4258_v41 }
 0x121   :  { %v3377_v48 = vpop.f32.mrb[0].mxu1 }
 0x122   :  { %v340_v49 = vpop.f32.mrb[1].mxu1  ;;  %v346_v59 = vadd.f32 %v3377_v48, %v3000_v58 }
 0x123   :  { %v341_v60 = vadd.f32 %v3000_v58, %v340_v49 }
 0x125   :  { %v3380_v61 = vpop.f32.mrb[2].mxu1  ;;  %v4564_v62 = vpack.c.bf16 %v346_v59, %v341_v60  ;;  %v4566_v1 = vpack.i.bf16 %v346_v59, %v341_v60 }
 0x126   :  { %v356_v63 = vadd.f32 %v3380_v61, %v3000_v58  ;;  %v350_v0 = vpop.f32.mrb[3].mxu1 }
 0x127   :  { %v351_v2 = vadd.f32 %v3000_v58, %v350_v0 }
 0x129   :  { %v4568_v3 = vpack.c.bf16 %v356_v63, %v351_v2  ;;  %v4570_v4 = vpack.i.bf16 %v356_v63, %v351_v2 }
 0x1a1   :  { %v3366_v50 = vpop.f32.mrb[0].mxu0 }
 0x1a2   :  { %v233_v51 = vmul.f32 5.656854, %v3366_v50  ;;  %v223_v52 = vpop.f32.mrb[1].mxu0 }
 0x1a3   :  { %v232_v55 = vmul.f32 5.656854, %v223_v52 }
 0x1a4   :  { %v4555_v57 = vadd.f32 %v235_v54, %v233_v51 }
 0x1a5   :  { %v4553_v56 = vadd.f32 %v234_v53, %v232_v55 }
 0x1a7   :  { %3389 = vmatprep.mubr.msk.f32.mxu1 %vm261_vm0, %v4553_v56 }
 0x1a8   :  { %3390 = vmatmul.mubr.msk.f32.vlgmr.msra.gmra.mrb[4].mxu1 %vm261_vm0, %v4555_v57 }
 0x27b   :  { %v3391_v6 = vpop.f32.mrb[4].mxu1 }
 0x27c   :  { %v460_v7 = vadd.f32 %v3391_v6, %v3005_v5  ;;  %v454_v8 = vpop.f32.mrb[5].mxu1 }
 0x27d   :  { %v455_v9 = vadd.f32 %v3005_v5, %v454_v8 }
 0x27e   :  { %v472_v29 = vmul.f32 0.25, %v460_v7 }
 0x27f   :  { %465 = vrot.lane.b32.xlu1 %v455_v9, %s4259_s15  ;;  %v4576_v10 = vpack.i.bf16 %v460_v7, %v455_v9  ;;  %v471_v11 = vmul.f32 0.25, %v455_v9 }
 0x281   :  { %3961 = vrot.lane.b32.xlu0 %v4576_v10, %s4260_s6  ;;  %3400 = vmatprep.mubr.msk.f32.mxu1 %vm483_vm3, %v471_v11 }
 0x283   :  { %467 = vrot.lane.b32.xlu1 %v460_v7, %s4259_s15 }
 0x2f1   :  { %v466_v12 = vpop.permute.xlu1 %465 }
 0x2f2   :  { %v473_v31 = vmul.f32 0.25, %v466_v12 }
 0x2f3   :  { %v3962_v13 = vpop.permute.xlu0 %3961 }
 0x2f4   :  { %v3964_v14 = vunpack.i.h.bf16 %v3962_v13  ;;  %v3963_v15 = vunpack.i.l.bf16 %v3962_v13 }
 0x2f5   :  { %v468_v16 = vpop.permute.xlu1 %467 }
 0x2f6   :  { %v3721_v18 = vpack.c.bf16 %v3964_v14, %v3963_v15  ;;  %v4588_v19 = vpack.i.bf16 %v468_v16, %v466_v12  ;;  %v474_v32 = vmul.f32 0.25, %v468_v16 }
 0x2f8   :  { %3723 = vmatprep.subr.msk.bf16.mxu1 %vm4584_vm4, %v3721_v18  ;;  %3966 = vrot.lane.b32.xlu1 %v4588_v19, %s4260_s6 }
 0x2f9   :  { %3726 = vmatpush3.bf16.xpose.msk.msra.mxu1 %vm4584_vm4, %v3721_v18 }
 0x36a   :  { %v3967_v20 = vpop.permute.xlu1 %3966 }
 0x36b   :  { %v3969_v23 = vunpack.i.h.bf16 %v3967_v20  ;;  %v3968_v24 = vunpack.i.l.bf16 %v3967_v20 }
 0x36d   :  { %v3727_v25 = vpack.c.bf16 %v3969_v23, %v3968_v24 }
 0x36f   :  { %3729 = vmatprep.subr.msk.bf16.mxu1 %vm4584_vm4, %v3727_v25 }
 0x370   :  { %3732 = vmatpush3.bf16.xpose.msk.msra.mxu1 %vm4584_vm4, %v3727_v25 }
 0x371   :  { %3742 = vmatprep.subr.bf16.mxu1 %v3741_v26 }
 0x377   :  { %3401 = vmatmul.mubr.msk.f32.vlgmr.msra.gmra.mrb[6].mxu1 %vm483_vm3, %v472_v29 }
 0x378   :  { %3403 = vmatprep.mubr.msk.f32.mxu1 %vm483_vm3, %v473_v31  ;;  %3744 = vmatpush3.bf16.msra.mxu1 %v3741_v26 }
 0x379   :  { %3746 = vmatprep.subr.bf16.mxu1 %v3745_v30 }
 0x37b   :  { %3404 = vmatmul.mubr.msk.f32.gmra.mrb[8].mxu1 %vm483_vm3, %v474_v32 }
 0x37c   :  { %3748 = vmatpush3.bf16.msra.mxu1 %v3745_v30 }
 0x37d   :  { %3759 = vmatprep.subr.msk.bf16.mxu1 %vm4584_vm4, %v4564_v62 }
 0x44a   :  { %v3402_v35 = vpop.f32.mrb[6].mxu1 }
 0x44b   :  { %v576_v36 = vadd.f32 %v3402_v35, %v4621_v33  ;;  %v570_v37 = vpop.f32.mrb[7].mxu1 }
 0x44c   :  { %v571_v38 = vadd.f32 %v570_v37, %v4626_v34 }
 0x44d   :  { %v592_v39 = vsel %vm261_vm0, %v576_v36, -inf }
 0x44e   :  { %593 = vmax.xlane.f32.xlu1 %v592_v39  ;;  %v3405_v41 = vpop.f32.mrb[8].mxu1  ;;  %v589_v42 = vsel %vm261_vm0, %v571_v38, -inf }
 0x44f   :  { %v580_v44 = vpop.f32.mrb[9].mxu1  ;;  %590 = vmax.xlane.f32.xlu0 %v589_v42  ;;  %v586_v46 = vadd.f32 %v3405_v41, %v4640_v43 }
 0x450   :  { %v581_v45 = vadd.f32 %v580_v44, %v4634_v40  ;;  %v3020_v44 = vld [vmem:[%s5189_s2] ss:$0 sm:$0xff] }
 0x451   :  { %v598_v48 = vsel %vm261_vm0, %v586_v46, -inf }
 0x452   :  { %v595_v47 = vsel %vm261_vm0, %v581_v45, -inf }
 0x453   :  { %596 = vmax.xlane.f32.xlu0 %v595_v47 }
 0x457   :  { %599 = vmax.xlane.f32.xlu0 %v598_v48 }
 0x4db   :  { %v594_v49 = vpop.xlane.xlu1 %593 }
 0x4dc   :  { %v602_v50 = vsub.f32 %v576_v36, %v594_v49  ;;  %v591_v51 = vpop.xlane.xlu0 %590 }
 0x4dd   :  { %v601_v52 = vsub.f32 %v571_v38, %v591_v51 }
 0x4de   :  { %v607_v53 = vmul.f32 1.442695, %v602_v50 }
 0x4df   :  { %v605_v54 = vmul.f32 1.442695, %v601_v52 }
 0x4e0   :  { %4070 = vpow2.f32 %v607_v53  ;;  %v597_v55 = vpop.xlane.xlu0 %596 }
 0x4e1   :  { %4072 = vpow2.f32 %v605_v54  ;;  %v603_v58 = vsub.f32 %v581_v45, %v597_v55 }
 0x4e3   :  { %v609_v59 = vmul.f32 1.442695, %v603_v58 }
 0x4e4   :  { %v600_v60 = vpop.xlane.xlu0 %599 }
 0x4e5   :  { %4074 = vpow2.f32 %v609_v59  ;;  %v604_v61 = vsub.f32 %v586_v46, %v600_v60 }
 0x4e7   :  { %v611_v63 = vmul.f32 1.442695, %v604_v61 }
 0x4e9   :  { %4076 = vpow2.f32 %v611_v63 }
 0x4ea   :  { %v4071_v0 = vpop.eup %4070 }
 0x4eb   :  { %v4073_v2 = vpop.eup %4072  ;;  %v616_v5 = vsel %vm261_vm0, %v4071_v0, 0.0 }
 0x4ec   :  { %617 = vadd.xlane.f32.xlu0 %v616_v5  ;;  %v613_v6 = vsel %vm261_vm0, %v4073_v2, 0.0  ;;  %v891_v5 = vld [vmem:[%s5142_s12] sm:$0xff] }
 0x4ed   :  { %614 = vadd.xlane.f32.xlu1 %v613_v6  ;;  %v892_v6 = vld [vmem:[%s5142_s12 + $0x8] sm:$0xff] }
 0x4ef   :  { %v4075_v7 = vpop.eup %4074 }
 0x4f0   :  { %v619_v8 = vsel %vm261_vm0, %v4075_v7, 0.0 }
 0x4f1   :  { %620 = vadd.xlane.f32.xlu1 %v619_v8  ;;  %v893_v8 = vld [vmem:[%s5142_s12 + $0x10] sm:$0xff] }
 0x4f3   :  { %v4077_v9 = vpop.eup %4076 }
 0x4f4   :  { %v622_v11 = vsel %vm261_vm0, %v4077_v9, 0.0 }
 0x4f5   :  { %623 = vadd.xlane.f32.xlu0 %v622_v11 }
 0x502   :  { %3971 = vrot.lane.b32.xlu1 %v4576_v10, %s4261_s9 }
 0x50b   :  { %3976 = vrot.lane.b32.xlu0 %v4588_v19, %s4261_s9 }
 0x579   :  { %v618_v13 = vpop.xlane.xlu0 %617 }
 0x57a   :  { %v615_v12 = vpop.xlane.xlu1 %614 }
 0x57b   :  { %4078 = vrcp.f32 %v615_v12 }
 0x57c   :  { %4080 = vrcp.f32 %v618_v13 }
 0x57e   :  { %v621_v14 = vpop.xlane.xlu1 %620 }
 0x57f   :  { %4082 = vrcp.f32 %v621_v14 }
 0x582   :  { %v3972_v15 = vpop.permute.xlu1 %3971  ;;  %v624_v16 = vpop.xlane.xlu0 %623 }
 0x583   :  { %v3974_v18 = vunpack.i.h.bf16 %v3972_v15  ;;  %v3973_v20 = vunpack.i.l.bf16 %v3972_v15  ;;  %4084 = vrcp.f32 %v624_v16 }
 0x585   :  { %v4079_v21 = vpop.eup %4078  ;;  %v3733_v22 = vpack.c.bf16 %v3974_v18, %v3973_v20 }
 0x586   :  { %v3977_v23 = vpop.permute.xlu0 %3976  ;;  %v626_v24 = vmul.f32 %v4079_v21, %v4073_v2  ;;  %v4081_v26 = vpop.eup %4080 }
 0x587   :  { %v3979_v25 = vunpack.i.h.bf16 %v3977_v23  ;;  %v3978_v10 = vunpack.i.l.bf16 %v3977_v23  ;;  %3734 = vmatprep.subr.bf16.mxu0 %v3733_v22  ;;  %v628_v28 = vmul.f32 %v4081_v26, %v4071_v0 }
 0x588   :  { %3736 = vmatpush3.bf16.msra.mxu0 %v3733_v22  ;;  %3414 = vmatprep.mubr.msk.f32.mxu0 %vm261_vm0, %v626_v24 }
 0x589   :  { %v3737_v19 = vpack.c.bf16 %v3979_v25, %v3978_v10  ;;  %v4083_v27 = vpop.eup %4082  ;;  %v3023_v25 = vld [vmem:[%s5190_s30] ss:$0 sm:$0xff] }
 0x58a   :  { %v630_v30 = vmul.f32 %v4083_v27, %v4075_v7  ;;  %v3749_v7 = vpack.c.bf16 %v892_v6, %v891_v5 }
 0x58b   :  { %3738 = vmatprep.subr.bf16.mxu0 %v3737_v19 }
 0x58c   :  { %3740 = vmatpush3.bf16.msra.mxu0 %v3737_v19  ;;  %v3024_v19 = vld [vmem:[%s5141_s11] ss:$0 sm:$0xff] }
 0x58d   :  { %v4085_v29 = vpop.eup %4084  ;;  %3750 = vmatprep.subr.bf16.mxu0 %v3749_v7 }
 0x58e   :  { %v632_v31 = vmul.f32 %v4085_v29, %v4077_v9  ;;  %v894_v9 = vld [vmem:[%s5142_s12 + $0x18] sm:$0xff] }
 0x58f   :  { %3415 = vmatmul.mubr.msk.f32.vlgmr.msra.gmra.mrb[2].mxu0 %vm261_vm0, %v628_v28  ;;  %v3753_v11 = vpack.c.bf16 %v894_v9, %v893_v8 }
 0x590   :  { %3417 = vmatprep.mubr.msk.f32.mxu0 %vm261_vm0, %v630_v30  ;;  %3752 = vmatpush3.bf16.msra.mxu0 %v3749_v7 }
 0x591   :  { %3754 = vmatprep.subr.bf16.mxu0 %v3753_v11 }
 0x593   :  { %3418 = vmatmul.mubr.msk.f32.gmra.mrb[4].mxu0 %vm261_vm0, %v632_v31 }
 0x594   :  { %3756 = vmatpush3.bf16.msra.mxu0 %v3753_v11 }
 0x662   :  { %v3416_v32 = vpop.f32.mrb[2].mxu0 }
 0x663   :  { %v723_v35 = vpop.f32.mrb[3].mxu0 }
 0x666   :  { %v3419_v36 = vpop.f32.mrb[4].mxu0 }
 0x667   :  { %v733_v37 = vpop.f32.mrb[5].mxu0 }
 0x668   :  { %744 = vrot.lane.b32.xlu1 %v733_v37, %s4254_s10 }
 0x66c   :  { %746 = vrot.lane.b32.xlu1 %v3419_v36, %s4254_s10 }
 0x6da   :  { %v745_v38 = vpop.permute.xlu1 %744 }
 0x6db   :  { %v750_v39 = vsel %vm483_vm3, %v723_v35, %v745_v38 }
 0x6dc   :  { %3428 = vmatprep.mubr.msk.f32.mxu1 %vm261_vm0, %v750_v39 }
 0x6de   :  { %v747_v41 = vpop.permute.xlu1 %746 }
 0x6df   :  { %v751_v42 = vsel %vm483_vm3, %v3416_v32, %v747_v41  ;;  %v3025_v32 = vld [vmem:[#allocation2] ss:$0 sm:$0xff] }
 0x6e0   :  { %3429 = vmatmul.mubr.msk.f32.vlgmr.msra.gmra.mrb[10].mxu1 %vm261_vm0, %v751_v42 }
 0x6e1   :  { %3762 = vmatpush3.bf16.xpose.msk.msra.mxu1 %vm4584_vm4, %v4564_v62 }
 0x6e2   :  { %3765 = vmatprep.subr.msk.bf16.mxu1 %vm4584_vm4, %v4568_v3 }
 0x6e9   :  { %3768 = vmatpush3.bf16.xpose.msk.msra.mxu1 %vm4584_vm4, %v4568_v3 }
 0x7b3   :  { %v3430_v45 = vpop.f32.mrb[10].mxu1 }
 0x7b4   :  { %v841_v46 = vadd.f32 %v3430_v45, %v3020_v44  ;;  %v835_v47 = vpop.f32.mrb[11].mxu1 }
 0x7b5   :  { %v836_v48 = vadd.f32 %v3020_v44, %v835_v47  ;;  %v4737_v47 = vld [vmem:[%s5191_s28 + $0x8] sm:$0xff] }
 0x7b6   :  { %v845_v49 = vadd.f32 %v841_v46, %v4555_v57 }
 0x7b7   :  { %v844_v62 = vadd.f32 %v836_v48, %v4553_v56  ;;  %v4742_v48 = vld [vmem:[%s5191_s28] sm:$0xff] }
 0x7b8   :  { %v851_v50 = vsel %vm261_vm0, %v845_v49, 0.0 }
 0x7b9   :  { %852 = vadd.xlane.f32.xlu1 %v851_v50  ;;  %v848_v51 = vsel %vm261_vm0, %v844_v62, 0.0 }
 0x7ba   :  { %849 = vadd.xlane.f32.xlu0 %v848_v51 }
 0x7ca   :  { %3981 = vrot.lane.b32.xlu1 %v4566_v1, %s4259_s15 }
 0x846   :  { %v853_v3 = vpop.xlane.xlu1 %852 }
 0x847   :  { %v856_v52 = vmul.f32 0.03125, %v853_v3  ;;  %v850_v53 = vpop.xlane.xlu0 %849 }
 0x848   :  { %v855_v54 = vmul.f32 0.03125, %v850_v53  ;;  %v4753_v53 = vld [vmem:[%s5191_s28 + $0x10] sm:$0xff] }
 0x849   :  { %v858_v55 = vsub.f32 %v845_v49, %v856_v52 }
 0x84a   :  { %v857_v58 = vsub.f32 %v844_v62, %v855_v54  ;;  %v4682_v59 = vpop.permute.xlu1 %3981 }
 0x84b   :  { %v3984_v57 = vunpack.i.h.bf16 %v4682_v59  ;;  %v3983_v56 = vunpack.i.l.bf16 %v4682_v59  ;;  %v860_v0 = vmul.f32 %v858_v55, %v858_v55 }
 0x84c   :  { %v859_v60 = vmul.f32 %v857_v58, %v857_v58 }
 0x84d   :  { %v3769_v61 = vpack.c.bf16 %v3984_v57, %v3983_v56  ;;  %v864_v2 = vsel %vm261_vm0, %v860_v0, 0.0 }
 0x84e   :  { %v861_v63 = vsel %vm261_vm0, %v859_v60, 0.0 }
 0x84f   :  { %3771 = vmatprep.subr.msk.bf16.mxu1 %vm4584_vm4, %v3769_v61  ;;  %862 = vadd.xlane.f32.xlu0 %v861_v63 }
 0x850   :  { %3774 = vmatpush3.bf16.xpose.msk.msra.mxu1 %vm4584_vm4, %v3769_v61 }
 0x853   :  { %865 = vadd.xlane.f32.xlu0 %v864_v2 }
 0x869   :  { %3986 = vrot.lane.b32.xlu0 %v4570_v4, %s4259_s15 }
 0x8dc   :  { %v863_v12 = vpop.xlane.xlu0 %862 }
 0x8dd   :  { %v867_v13 = vmul.f32 0.03125, %v863_v12 }
 0x8df   :  { %v869_v14 = vadd.f32 1e-05, %v867_v13 }
 0x8e0   :  { %v866_v15 = vpop.xlane.xlu0 %865 }
 0x8e1   :  { %4086 = vrsqrt.f32 %v869_v14  ;;  %v868_v16 = vmul.f32 0.03125, %v866_v15 }
 0x8e3   :  { %v870_v18 = vadd.f32 1e-05, %v868_v16 }
 0x8e4   :  { %v4706_v20 = vpop.permute.xlu0 %3986 }
 0x8e5   :  { %4088 = vrsqrt.f32 %v870_v18  ;;  %v3989_v21 = vunpack.i.h.bf16 %v4706_v20  ;;  %v3988_v22 = vunpack.i.l.bf16 %v4706_v20 }
 0x8e7   :  { %v3775_v23 = vpack.c.bf16 %v3989_v21, %v3988_v22 }
 0x8e9   :  { %3777 = vmatprep.subr.msk.bf16.mxu1 %vm4584_vm4, %v3775_v23 }
 0x8ea   :  { %3780 = vmatpush3.bf16.xpose.msk.msra.mxu1 %vm4584_vm4, %v3775_v23 }
 0x8eb   :  { %v4087_v24 = vpop.eup %4086 }
 0x8ec   :  { %v873_v10 = vmul.f32 %v4087_v24, %v857_v58 }
 0x8ee   :  { %v881_v26 = vmul.f32 %v3023_v25, %v873_v10 }
 0x8ef   :  { %v4089_v27 = vpop.eup %4088 }
 0x8f0   :  { %v874_v28 = vmul.f32 %v4089_v27, %v858_v55  ;;  %v4720_v29 = vadd.f32 %v3024_v19, %v881_v26  ;;  %v4758_v55 = vld [vmem:[%s5191_s28 + $0x18] sm:$0xff] }
 0x8f2   :  { %v882_v30 = vmul.f32 %v3023_v25, %v874_v28  ;;  %3439 = vmatprep.mubr.msk.f32.mxu0 %vm261_vm0, %v4720_v29 }
 0x8f4   :  { %v4724_v31 = vadd.f32 %v3024_v19, %v882_v30 }
 0x8f6   :  { %3440 = vmatmul.mubr.msk.f32.vlgmr.msra.gmra.mrb[6].mxu0 %vm261_vm0, %v4724_v31 }
 0x9c9   :  { %v3441_v35 = vpop.f32.mrb[6].mxu0 }
 0x9ca   :  { %v980_v36 = vadd.f32 %v3441_v35, %v3025_v32  ;;  %v974_v37 = vpop.f32.mrb[7].mxu0 }
 0x9cb   :  { %v975_v38 = vadd.f32 %v3025_v32, %v974_v37 }
 0x9cc   :  { %v992_v41 = vmul.f32 0.25, %v980_v36 }
 0x9cd   :  { %v991_v39 = vmul.f32 0.25, %v975_v38  ;;  %985 = vrot.lane.b32.xlu1 %v975_v38, %s4259_s15 }
 0x9cf   :  { %3458 = vmatprep.mubr.msk.f32.mxu1 %vm483_vm3, %v991_v39 }
 0x9d0   :  { %3459 = vmatmul.mubr.msk.f32.vlgmr.msra.gmra.mrb[12].mxu1 %vm483_vm3, %v992_v41 }
 0x9d1   :  { %987 = vrot.lane.b32.xlu1 %v980_v36, %s4259_s15 }
 0xa3f   :  { %v986_v42 = vpop.permute.xlu1 %985 }
 0xa40   :  { %v993_v44 = vmul.f32 0.25, %v986_v42 }
 0xa42   :  { %3461 = vmatprep.mubr.msk.f32.mxu1 %vm483_vm3, %v993_v44 }
 0xa43   :  { %v988_v45 = vpop.permute.xlu1 %987 }
 0xa44   :  { %v994_v46 = vmul.f32 0.25, %v988_v45 }
 0xa46   :  { %3462 = vmatmul.mubr.msk.f32.gmra.mrb[14].mxu1 %vm483_vm3, %v994_v46 }
 0xaa3   :  { %v3460_v49 = vpop.f32.mrb[12].mxu1 }
 0xaa4   :  { %v1095_v62 = vadd.f32 %v3460_v49, %v4737_v47  ;;  %v1089_v50 = vpop.f32.mrb[13].mxu1 }
 0xaa5   :  { %v1090_v51 = vadd.f32 %v1089_v50, %v4742_v48 }
 0xaa6   :  { %v1112_v3 = vsel %vm1108_vm5, %v1095_v62, -inf }
 0xaa7   :  { %1113 = vmax.xlane.f32.xlu1 %v1112_v3  ;;  %v1109_v52 = vsel %vm1108_vm5, %v1090_v51, -inf }
 0xaa8   :  { %1110 = vmax.xlane.f32.xlu0 %v1109_v52 }
 0xab8   :  { %3991 = vrot.lane.b32.xlu1 %v4566_v1, %s4260_s6 }
 0xb19   :  { %v3463_v54 = vpop.f32.mrb[14].mxu1 }
 0xb1a   :  { %v1099_v58 = vpop.f32.mrb[15].mxu1  ;;  %v1105_v56 = vadd.f32 %v3463_v54, %v4758_v55 }
 0xb1b   :  { %v1100_v57 = vadd.f32 %v1099_v58, %v4753_v53 }
 0xb1c   :  { %v1118_v61 = vsel %vm1108_vm5, %v1105_v56, -inf }
 0xb1d   :  { %v1115_v60 = vsel %vm1108_vm5, %v1100_v57, -inf }
 0xb1e   :  { %1116 = vmax.xlane.f32.xlu0 %v1115_v60 }
 0xb22   :  { %1119 = vmax.xlane.f32.xlu0 %v1118_v61  ;;  %v1284_v61 = vld [vmem:[%s5146_s16] sm:$0xff] }
 0xb34   :  { %v1114_v63 = vpop.xlane.xlu1 %1113 }
 0xb35   :  { %v1122_v0 = vsub.f32 %v1095_v62, %v1114_v63  ;;  %v1111_v2 = vpop.xlane.xlu0 %1110  ;;  %v1285_v63 = vld [vmem:[%s5146_s16 + $0x8] sm:$0xff] }
 0xb36   :  { %v1121_v5 = vsub.f32 %v1090_v51, %v1111_v2  ;;  %v3797_v2 = vpack.c.bf16 %v1285_v63, %v1284_v61 }
 0xb37   :  { %v1127_v6 = vmul.f32 1.442695, %v1122_v0  ;;  %v1286_v0 = vld [vmem:[%s5146_s16 + $0x10] sm:$0xff] }
 0xb38   :  { %v1125_v7 = vmul.f32 1.442695, %v1121_v5  ;;  %v3992_v8 = vpop.permute.xlu1 %3991  ;;  %v1287_v5 = vld [vmem:[%s5146_s16 + $0x18] sm:$0xff] }
 0xb39   :  { %4090 = vpow2.f32 %v1127_v6  ;;  %v3994_v9 = vunpack.i.h.bf16 %v3992_v8  ;;  %v3993_v11 = vunpack.i.l.bf16 %v3992_v8  ;;  %v3801_v6 = vpack.c.bf16 %v1287_v5, %v1286_v0  ;;  %v3047_v5 = vld [vmem:[%s5148_s18] ss:$0 sm:$0xff] }
 0xb3a   :  { %4092 = vpow2.f32 %v1125_v7 }
 0xb3b   :  { %v3781_v12 = vpack.c.bf16 %v3994_v9, %v3993_v11 }
 0xb3d   :  { %3782 = vmatprep.subr.bf16.mxu0 %v3781_v12 }
 0xb3e   :  { %3784 = vmatpush3.bf16.msra.mxu0 %v3781_v12 }
 0xb43   :  { %v4091_v13 = vpop.eup %4090 }
 0xb44   :  { %v4093_v14 = vpop.eup %4092  ;;  %v1136_v15 = vsel %vm1108_vm5, %v4091_v13, 0.0 }
 0xb45   :  { %1137 = vadd.xlane.f32.xlu0 %v1136_v15  ;;  %v1133_v16 = vsel %vm1108_vm5, %v4093_v14, 0.0 }
 0xb46   :  { %1134 = vadd.xlane.f32.xlu1 %v1133_v16  ;;  %v3044_v16 = vld [vmem:[#allocation5] ss:$0 sm:$0xff] }
 0xb57   :  { %4001 = vrot.lane.b32.xlu1 %v4682_v59, %s4260_s6 }
 0xbab   :  { %v1117_v18 = vpop.xlane.xlu0 %1116 }
 0xbac   :  { %v1123_v21 = vsub.f32 %v1100_v57, %v1117_v18 }
 0xbae   :  { %v1129_v22 = vmul.f32 1.442695, %v1123_v21 }
 0xbaf   :  { %v1120_v23 = vpop.xlane.xlu0 %1119 }
 0xbb0   :  { %4094 = vpow2.f32 %v1129_v22  ;;  %v1124_v24 = vsub.f32 %v1105_v56, %v1120_v23 }
 0xbb2   :  { %v1131_v25 = vmul.f32 1.442695, %v1124_v24 }
 0xbb4   :  { %4096 = vpow2.f32 %v1131_v25 }
 0xbba   :  { %v4095_v10 = vpop.eup %4094 }
 0xbbb   :  { %v1139_v19 = vsel %vm1108_vm5, %v4095_v10, 0.0 }
 0xbbc   :  { %1140 = vadd.xlane.f32.xlu1 %v1139_v19 }
 0xbbe   :  { %v4097_v26 = vpop.eup %4096 }
 0xbbf   :  { %v1142_v27 = vsel %vm1108_vm5, %v4097_v26, 0.0 }
 0xbc0   :  { %1143 = vadd.xlane.f32.xlu0 %v1142_v27 }
 0xbcd   :  { %4006 = vrot.lane.b32.xlu1 %v4706_v20, %s4260_s6 }
 0xbd2   :  { %v1138_v35 = vpop.xlane.xlu0 %1137 }
 0xbd3   :  { %v1135_v28 = vpop.xlane.xlu1 %1134 }
 0xbd4   :  { %4098 = vrcp.f32 %v1135_v28 }
 0xbd5   :  { %4100 = vrcp.f32 %v1138_v35 }
 0xbd6   :  { %3996 = vrot.lane.b32.xlu0 %v4570_v4, %s4260_s6 }
 0xbd7   :  { %v4002_v36 = vpop.permute.xlu1 %4001 }
 0xbd8   :  { %v4004_v41 = vunpack.i.h.bf16 %v4002_v36  ;;  %v4003_v42 = vunpack.i.l.bf16 %v4002_v36 }
 0xbda   :  { %v3789_v62 = vpack.c.bf16 %v4004_v41, %v4003_v42  ;;  %v1424_v42 = vld [vmem:[%s5150_s20 + $0x10] sm:$0xff] }
 0xbde   :  { %v4099_v30 = vpop.eup %4098 }
 0xbdf   :  { %v1146_v32 = vmul.f32 %v4099_v30, %v4093_v14  ;;  %v4101_v52 = vpop.eup %4100 }
 0xbe0   :  { %v1148_v58 = vmul.f32 %v4101_v52, %v4091_v13  ;;  %v1520_v52 = vld [vmem:[%s5152_s22 + $0x20] sm:$0xff] }
 0xbe1   :  { %3480 = vmatprep.mubr.msk.f32.mxu0 %vm1108_vm5, %v1146_v32 }
 0xc49   :  { %v1141_v37 = vpop.xlane.xlu1 %1140 }
 0xc4a   :  { %4102 = vrcp.f32 %v1141_v37 }
 0xc4d   :  { %v1144_v38 = vpop.xlane.xlu0 %1143  ;;  %v4007_v46 = vpop.permute.xlu1 %4006 }
 0xc4e   :  { %v4009_v50 = vunpack.i.h.bf16 %v4007_v46  ;;  %v4008_v51 = vunpack.i.l.bf16 %v4007_v46  ;;  %4104 = vrcp.f32 %v1144_v38  ;;  %v1516_v46 = vld [vmem:[%s5152_s22] sm:$0xff] }
 0xc50   :  { %v3793_v3 = vpack.c.bf16 %v4009_v50, %v4008_v51  ;;  %v1519_v51 = vld [vmem:[%s5152_s22 + $0x18] sm:$0xff] }
 0xc51   :  { %v3997_v39 = vpop.permute.xlu0 %3996 }
 0xc52   :  { %v3999_v44 = vunpack.i.h.bf16 %v3997_v39  ;;  %v3998_v45 = vunpack.i.l.bf16 %v3997_v39  ;;  %v1423_v39 = vld [vmem:[%s5150_s20 + $0x8] sm:$0xff] }
 0xc54   :  { %v3785_v49 = vpack.c.bf16 %v3999_v44, %v3998_v45  ;;  %v4103_v54 = vpop.eup %4102  ;;  %v1425_v44 = vld [vmem:[%s5150_s20 + $0x18] sm:$0xff] }
 0xc55   :  { %v1150_v56 = vmul.f32 %v4103_v54, %v4095_v10  ;;  %v3809_v45 = vpack.c.bf16 %v1425_v44, %v1424_v42  ;;  %v1521_v54 = vld [vmem:[%s5152_s22 + $0x28] sm:$0xff] }
 0xc56   :  { %3786 = vmatprep.subr.bf16.mxu0 %v3785_v49 }
 0xc57   :  { %3788 = vmatpush3.bf16.msra.mxu0 %v3785_v49  ;;  %v1517_v49 = vld [vmem:[%s5152_s22 + $0x8] sm:$0xff] }
 0xc58   :  { %3790 = vmatprep.subr.bf16.mxu0 %v3789_v62  ;;  %v4105_v57 = vpop.eup %4104  ;;  %v3813_v50 = vpack.c.bf16 %v1517_v49, %v1516_v46 }
 0xc59   :  { %v1152_v60 = vmul.f32 %v4105_v57, %v4097_v26 }
 0xc5a   :  { %3814 = vmatprep.subr.bf16.mxu1 %v3813_v50 }
 0xc5b   :  { %3792 = vmatpush3.bf16.msra.mxu0 %v3789_v62  ;;  %v1518_v62 = vld [vmem:[%s5152_s22 + $0x10] sm:$0xff]  ;;  %3816 = vmatpush3.bf16.msra.mxu1 %v3813_v50  ;;  %v3057_v50 = vld [vmem:[%s5182_s5 + $0x20] sm:$0xff] }
 0xc5c   :  { %3794 = vmatprep.subr.bf16.mxu0 %v3793_v3 }
 0xc5f   :  { %3796 = vmatpush3.bf16.msra.mxu0 %v3793_v3  ;;  %v3817_v3 = vpack.c.bf16 %v1519_v51, %v1518_v62  ;;  %v3058_v51 = vld [vmem:[%s5182_s5 + $0x28] sm:$0xff] }
 0xc60   :  { %3798 = vmatprep.subr.bf16.mxu0 %v3797_v2 }
 0xc61   :  { %3818 = vmatprep.subr.bf16.mxu1 %v3817_v3 }
 0xc62   :  { %3481 = vmatmul.mubr.msk.f32.vlgmr.msra.gmra.mrb[8].mxu0 %vm1108_vm5, %v1148_v58  ;;  %v3821_v58 = vpack.c.bf16 %v1521_v54, %v1520_v52  ;;  %3820 = vmatpush3.bf16.msra.mxu1 %v3817_v3  ;;  %v3829_v3 = vpack.c.bf16 %v3058_v51, %v3057_v50  ;;  %v3059_v52 = vld [vmem:[%s5182_s5 + $0x30] sm:$0xff]  ;;  %v3060_v54 = vld [vmem:[%s5182_s5 + $0x38] sm:$0xff] }
 0xc63   :  { %3483 = vmatprep.mubr.msk.f32.mxu0 %vm1108_vm5, %v1150_v56  ;;  %3800 = vmatpush3.bf16.msra.mxu0 %v3797_v2 }
 0xc64   :  { %3802 = vmatprep.subr.bf16.mxu0 %v3801_v6  ;;  %3822 = vmatprep.subr.bf16.mxu1 %v3821_v58 }
 0xc66   :  { %3484 = vmatmul.mubr.msk.f32.gmra.mrb[10].mxu0 %vm1108_vm5, %v1152_v60  ;;  %3824 = vmatpush3.bf16.msra.mxu1 %v3821_v58  ;;  %v3833_v58 = vpack.c.bf16 %v3060_v54, %v3059_v52 }
 0xc67   :  { %3804 = vmatpush3.bf16.msra.mxu0 %v3801_v6 }
 0xd35   :  { %v3482_v7 = vpop.f32.mrb[8].mxu0 }
 0xd36   :  { %v1255_v8 = vpop.f32.mrb[9].mxu0 }
 0xd39   :  { %v3485_v9 = vpop.f32.mrb[10].mxu0 }
 0xd3a   :  { %1278 = vrot.lane.b32.xlu1 %v3485_v9, %s4254_s10  ;;  %v1265_v11 = vpop.f32.mrb[11].mxu0 }
 0xd3b   :  { %1276 = vrot.lane.b32.xlu0 %v1265_v11, %s4254_s10 }
 0xdac   :  { %v1279_v12 = vpop.permute.xlu1 %1278 }
 0xdad   :  { %v1277_v13 = vpop.permute.xlu0 %1276  ;;  %v1283_v15 = vsel %vm483_vm3, %v3482_v7, %v1279_v12  ;;  %v3048_v7 = vld [vmem:[%s5149_s19] ss:$0 sm:$0xff] }
 0xdae   :  { %v1282_v14 = vsel %vm483_vm3, %v1255_v8, %v1277_v13 }
 0xdaf   :  { %3494 = vmatprep.mubr.msk.f32.mxu0 %vm261_vm0, %v1282_v14 }
 0xdb0   :  { %3495 = vmatmul.mubr.msk.f32.vlgmr.msra.gmra.mrb[12].mxu0 %vm261_vm0, %v1283_v15  ;;  %v1522_v15 = vld [vmem:[%s5152_s22 + $0x30] sm:$0xff] }
 0xe83   :  { %v3496_v18 = vpop.f32.mrb[12].mxu0 }
 0xe84   :  { %v1373_v21 = vadd.f32 %v3496_v18, %v3044_v16  ;;  %v1367_v22 = vpop.f32.mrb[13].mxu0 }
 0xe85   :  { %v1368_v23 = vadd.f32 %v3044_v16, %v1367_v22  ;;  %v1523_v16 = vld [vmem:[%s5152_s22 + $0x38] sm:$0xff] }
 0xe86   :  { %v1377_v24 = vadd.f32 %v1373_v21, %v4724_v31  ;;  %v3825_v18 = vpack.c.bf16 %v1523_v16, %v1522_v15  ;;  %v3049_v21 = vld [vmem:[#allocation7] ss:$0 sm:$0xff]  ;;  %v3062_v15 = vld [vmem:[%s5184_s21 + $0x1] ss:$0 sm:$0xff]  ;;  %s4224_s21 = scalar_lea.vmem %s2984_s8, 256 }
 0xe87   :  { %v1376_v25 = vadd.f32 %v1368_v23, %v4720_v29  ;;  %v1422_v29 = vld [vmem:[%s5150_s20] sm:$0xff]  ;;  %p4225_p10 = scmp.ne.s32.totalorder %s2984_s8, %s4224_s21  ;;  %p4230_p12 = scmp.lt.s32.totalorder %s4224_s21, %s4224_s21 }
 0xe88   :  { %v1383_v10 = vsel %vm261_vm0, %v1377_v24, 0.0  ;;  %v3805_v41 = vpack.c.bf16 %v1423_v39, %v1422_v29  ;;  %3826 = vmatprep.subr.bf16.mxu1 %v3825_v18 }
 0xe89   :  { %1384 = vadd.xlane.f32.xlu1 %v1383_v10  ;;  %v1380_v19 = vsel %vm261_vm0, %v1376_v25, 0.0  ;;  %3828 = vmatpush3.bf16.msra.mxu1 %v3825_v18  ;;  %p4231_p13 = por %p4230_p12, %p4229_p11 }
 0xe8a   :  { %1381 = vadd.xlane.f32.xlu0 %v1380_v19  ;;  %3806 = vmatprep.subr.bf16.mxu0 %v3805_v41 }
 0xe8b   :  { %3808 = vmatpush3.bf16.msra.mxu0 %v3805_v41  ;;  %p4232_p0 = pnand %p4231_p13, %p4225_p10 }
 0xe8c   :  { %3810 = vmatprep.subr.bf16.mxu0 %v3809_v45 }
 0xe8f   :  { %3812 = vmatpush3.bf16.msra.mxu0 %v3809_v45 }
 0xe90   :  { %3830 = vmatprep.subr.bf16.mxu0 %v3829_v3 }
 0xf16   :  { %v1385_v26 = vpop.xlane.xlu1 %1384 }
 0xf17   :  { %v1387_v27 = vmul.f32 0.03125, %v1385_v26  ;;  %v1382_v28 = vpop.xlane.xlu0 %1381  ;;  %v3052_v26 = vld [vmem:[%s5153_s23] ss:$0 sm:$0xff] }
 0xf18   :  { %v1386_v30 = vmul.f32 0.03125, %v1382_v28 }
 0xf19   :  { %v1389_v32 = vsub.f32 %v1377_v24, %v1387_v27 }
 0xf1a   :  { %v1388_v35 = vsub.f32 %v1376_v25, %v1386_v30 }
 0xf1b   :  { %v1391_v38 = vmul.f32 %v1389_v32, %v1389_v32 }
 0xf1c   :  { %v1390_v36 = vmul.f32 %v1388_v35, %v1388_v35 }
 0xf1d   :  { %v1395_v31 = vsel %vm261_vm0, %v1391_v38, 0.0 }
 0xf1e   :  { %v1392_v37 = vsel %vm261_vm0, %v1390_v36, 0.0 }
 0xf1f   :  { %1393 = vadd.xlane.f32.xlu0 %v1392_v37 }
 0xf23   :  { %1396 = vadd.xlane.f32.xlu0 %v1395_v31 }
 0xfac   :  { %v1394_v57 = vpop.xlane.xlu0 %1393 }
 0xfad   :  { %v1398_v56 = vmul.f32 0.03125, %v1394_v57 }
 0xfaf   :  { %v1400_v60 = vadd.f32 1e-05, %v1398_v56 }
 0xfb0   :  { %v1397_v61 = vpop.xlane.xlu0 %1396 }
 0xfb1   :  { %4106 = vrsqrt.f32 %v1400_v60  ;;  %v1399_v63 = vmul.f32 0.03125, %v1397_v61 }
 0xfb3   :  { %v1401_v0 = vadd.f32 1e-05, %v1399_v63 }
 0xfb5   :  { %4108 = vrsqrt.f32 %v1401_v0 }
 0xfbb   :  { %v4107_v2 = vpop.eup %4106 }
 0xfbc   :  { %v1404_v6 = vmul.f32 %v4107_v2, %v1388_v35 }
 0xfbe   :  { %v1412_v8 = vmul.f32 %v3047_v5, %v1404_v6 }
 0xfbf   :  { %v4109_v9 = vpop.eup %4108 }
 0xfc0   :  { %v1405_v11 = vmul.f32 %v4109_v9, %v1389_v32  ;;  %v1420_v12 = vadd.f32 %v3048_v7, %v1412_v8  ;;  %v3056_v9 = vld [vmem:[%s5155_s25] ss:$0 sm:$0xff] }
 0xfc2   :  { %v1413_v13 = vmul.f32 %v3047_v5, %v1405_v11  ;;  %3505 = vmatprep.mubr.msk.f32.mxu0 %vm261_vm0, %v1420_v12  ;;  %v3055_v5 = vld [vmem:[%s5154_s24] ss:$0 sm:$0xff] }
 0xfc4   :  { %v1421_v14 = vadd.f32 %v3048_v7, %v1413_v13 }
 0xfc6   :  { %3506 = vmatmul.mubr.msk.f32.vlgmr.msra.gmra.mrb[14].mxu0 %vm261_vm0, %v1421_v14 }
 0xfc7   :  { %3832 = vmatpush3.bf16.msra.mxu0 %v3829_v3 }
 0xfc8   :  { %3834 = vmatprep.subr.bf16.mxu0 %v3833_v58 }
 0xfcb   :  { %3836 = vmatpush3.bf16.msra.mxu0 %v3833_v58 }
0x1099   :  { %v3507_v22 = vpop.f32.mrb[14].mxu0 }
0x109a   :  { %v1511_v23 = vadd.f32 %v3507_v22, %v3049_v21  ;;  %v1505_v24 = vpop.f32.mrb[15].mxu0 }
0x109b   :  { %v1506_v25 = vadd.f32 %v3049_v21, %v1505_v24 }
0x109c   :  { %v1515_v19 = vmax.f32 %v1511_v23, 0.0 }
0x109d   :  { %v1514_v10 = vmax.f32 %v1506_v25, 0.0 }
0x109f   :  { %3524 = vmatprep.mubr.msk.f32.mxu1 %vm1108_vm5, %v1514_v10 }
0x10a0   :  { %3525 = vmatmul.mubr.msk.f32.vlgmr.msra.gmra.mrb[16].mxu1 %vm1108_vm5, %v1515_v19 }
0x1173   :  { %v3526_v27 = vpop.f32.mrb[16].mxu1 }
0x1174   :  { %v1609_v28 = vadd.f32 %v3526_v27, %v3052_v26  ;;  %v1603_v30 = vpop.f32.mrb[17].mxu1 }
0x1175   :  { %v1604_v32 = vadd.f32 %v3052_v26, %v1603_v30 }
0x1176   :  { %v1613_v35 = vadd.f32 %v1609_v28, %v1421_v14 }
0x1177   :  { %v1612_v36 = vadd.f32 %v1604_v32, %v1420_v12 }
0x1178   :  { %v1619_v37 = vsel %vm261_vm0, %v1613_v35, 0.0 }
0x1179   :  { %1620 = vadd.xlane.f32.xlu0 %v1619_v37  ;;  %v1616_v38 = vsel %vm261_vm0, %v1612_v36, 0.0 }
0x117a   :  { %1617 = vadd.xlane.f32.xlu1 %v1616_v38 }
0x1206   :  { %v1621_v31 = vpop.xlane.xlu0 %1620 }
0x1207   :  { %v1623_v29 = vmul.f32 0.03125, %v1621_v31  ;;  %v1618_v39 = vpop.xlane.xlu1 %1617 }
0x1208   :  { %v1622_v41 = vmul.f32 0.03125, %v1618_v39 }
0x1209   :  { %v1625_v42 = vsub.f32 %v1613_v35, %v1623_v29 }
0x120a   :  { %v1624_v44 = vsub.f32 %v1612_v36, %v1622_v41 }
0x120b   :  { %v1627_v45 = vmul.f32 %v1625_v42, %v1625_v42 }
0x120c   :  { %v1626_v46 = vmul.f32 %v1624_v44, %v1624_v44 }
0x120d   :  { %v1631_v49 = vsel %vm261_vm0, %v1627_v45, 0.0 }
0x120e   :  { %1632 = vadd.xlane.f32.xlu0 %v1631_v49  ;;  %v1628_v62 = vsel %vm261_vm0, %v1626_v46, 0.0 }
0x120f   :  { %1629 = vadd.xlane.f32.xlu1 %v1628_v62 }
0x129b   :  { %v1633_v57 = vpop.xlane.xlu0 %1632 }
0x129c   :  { %v1635_v56 = vmul.f32 0.03125, %v1633_v57  ;;  %v1630_v60 = vpop.xlane.xlu1 %1629 }
0x129d   :  { %v1634_v61 = vmul.f32 0.03125, %v1630_v60 }
0x129e   :  { %v1637_v63 = vadd.f32 1e-05, %v1635_v56 }
0x129f   :  { %v1636_v0 = vadd.f32 1e-05, %v1634_v61 }
0x12a0   :  { %4110 = vrsqrt.f32 %v1637_v63 }
0x12a1   :  { %4112 = vrsqrt.f32 %v1636_v0 }
0x12aa   :  { %v4111_v2 = vpop.eup %4110 }
0x12ab   :  { %v4113_v6 = vpop.eup %4112  ;;  %v1641_v7 = vmul.f32 %v4111_v2, %v1625_v42 }
0x12ac   :  { %v1640_v8 = vmul.f32 %v4113_v6, %v1624_v44 }
0x12ad   :  { %v1649_v11 = vmul.f32 %v3055_v5, %v1641_v7 }
0x12ae   :  { %v1648_v12 = vmul.f32 %v3055_v5, %v1640_v8 }
0x12af   :  { %v4875_v14 = vadd.f32 %v3056_v9, %v1649_v11 }
0x12b0   :  { %v4873_v13 = vadd.f32 %v3056_v9, %v1648_v12 }
0x12b2   :  { %3535 = vmatprep.mubr.msk.f32.mxu0 %vm261_vm0, %v4873_v13 }
0x12b3   :  { %3536 = vmatmul.mubr.msk.f32.vlgmr.msra.gmra.mrb[16].mxu0 %vm261_vm0, %v4875_v14 }
0x1386   :  { %v3537_v16 = vpop.f32.mrb[16].mxu0 }
0x1387   :  { %v1749_v18 = vadd.f32 %v3537_v16, %v3062_v15  ;;  %v1743_v21 = vpop.f32.mrb[17].mxu0 }
0x1388   :  { %v1744_v22 = vadd.f32 %v3062_v15, %v1743_v21 }
0x1389   :  { %1756 = vrot.lane.b32.xlu0 %v1749_v18, %s4259_s15  ;;  %v1761_v38 = vmul.f32 0.25, %v1749_v18 }
0x138a   :  { %1754 = vrot.lane.b32.xlu1 %v1744_v22, %s4259_s15  ;;  %v1760_v23 = vmul.f32 0.25, %v1744_v22  ;;  %v4886_v24 = vpack.i.bf16 %v1749_v18, %v1744_v22 }
0x138c   :  { %3546 = vmatprep.mubr.msk.f32.mxu0 %vm483_vm3, %v1760_v23 }
0x138e   :  { %4011 = vrot.lane.b32.xlu1 %v4886_v24, %s4260_s6 }
0x13fb   :  { %v1757_v25 = vpop.permute.xlu0 %1756 }
0x13fc   :  { %v1755_v10 = vpop.permute.xlu1 %1754  ;;  %v1763_v29 = vmul.f32 0.25, %v1757_v25 }
0x13fd   :  { %v4891_v19 = vpack.i.bf16 %v1757_v25, %v1755_v10  ;;  %v1762_v31 = vmul.f32 0.25, %v1755_v10 }
0x13ff   :  { %4016 = vrot.lane.b32.xlu1 %v4891_v19, %s4260_s6 }
0x1400   :  { %v4012_v26 = vpop.permute.xlu1 %4011 }
0x1401   :  { %v4014_v27 = vunpack.i.h.bf16 %v4012_v26  ;;  %v4013_v28 = vunpack.i.l.bf16 %v4012_v26 }
0x1403   :  { %v3837_v30 = vpack.c.bf16 %v4014_v27, %v4013_v28 }
0x1405   :  { %3839 = vmatprep.subr.msk.bf16.mxu0 %vm4584_vm4, %v3837_v30 }
0x1406   :  { %3842 = vmatpush3.bf16.xpose.msk.msra.mxu0 %vm4584_vm4, %v3837_v30 }
0x1471   :  { %v4017_v32 = vpop.permute.xlu1 %4016 }
0x1472   :  { %v4019_v35 = vunpack.i.h.bf16 %v4017_v32  ;;  %v4018_v36 = vunpack.i.l.bf16 %v4017_v32 }
0x1474   :  { %v3843_v37 = vpack.c.bf16 %v4019_v35, %v4018_v36 }
0x1476   :  { %3845 = vmatprep.subr.msk.bf16.mxu0 %vm4584_vm4, %v3843_v37 }
0x1477   :  { %3848 = vmatpush3.bf16.xpose.msk.msra.mxu0 %vm4584_vm4, %v3843_v37 }
0x147e   :  { %3547 = vmatmul.mubr.msk.f32.vlgmr.msra.gmra.mrb[18].mxu0 %vm483_vm3, %v1761_v38 }
0x147f   :  { %3549 = vmatprep.mubr.msk.f32.mxu0 %vm483_vm3, %v1762_v31 }
0x1482   :  { %3550 = vmatmul.mubr.msk.f32.gmra.mrb[20].mxu0 %vm483_vm3, %v1763_v29  ;;  %v3077_v29 = vld [vmem:[%s5187_s29 + $0x20] sm:$0xff] }
0x1551   :  { %v3548_v39 = vpop.f32.mrb[18].mxu0 }
0x1552   :  { %v1864_v41 = vadd.f32 %v3548_v39, %v4621_v33  ;;  %v1858_v42 = vpop.f32.mrb[19].mxu0  ;;  %v3078_v39 = vld [vmem:[%s5187_s29 + $0x28] sm:$0xff] }
0x1553   :  { %v1859_v44 = vadd.f32 %v1858_v42, %v4626_v34  ;;  %v3079_v42 = vld [vmem:[%s5187_s29 + $0x30] sm:$0xff] }
0x1554   :  { %v1880_v45 = vsel %vm261_vm0, %v1864_v41, -inf }
0x1555   :  { %1881 = vmax.xlane.f32.xlu1 %v1880_v45  ;;  %v3551_v46 = vpop.f32.mrb[20].mxu0  ;;  %v1877_v49 = vsel %vm261_vm0, %v1859_v44, -inf }
0x1556   :  { %v1868_v62 = vpop.f32.mrb[21].mxu0  ;;  %1878 = vmax.xlane.f32.xlu0 %v1877_v49  ;;  %v1874_v51 = vadd.f32 %v3551_v46, %v4640_v43 }
0x1557   :  { %v1869_v50 = vadd.f32 %v1868_v62, %v4634_v40 }
0x1558   :  { %v1886_v33 = vsel %vm261_vm0, %v1874_v51, -inf }
0x1559   :  { %v1883_v3 = vsel %vm261_vm0, %v1869_v50, -inf }
0x155a   :  { %1884 = vmax.xlane.f32.xlu0 %v1883_v3 }
0x155e   :  { %1887 = vmax.xlane.f32.xlu0 %v1886_v33 }
0x15e2   :  { %v1882_v52 = vpop.xlane.xlu1 %1881 }
0x15e3   :  { %v1890_v34 = vsub.f32 %v1864_v41, %v1882_v52  ;;  %v1879_v54 = vpop.xlane.xlu0 %1878  ;;  %v3857_v41 = vpack.c.bf16 %v3078_v39, %v3077_v29 }
0x15e4   :  { %v1889_v58 = vsub.f32 %v1859_v44, %v1879_v54  ;;  %v3080_v44 = vld [vmem:[%s5187_s29 + $0x38] sm:$0xff] }
0x15e5   :  { %v1895_v57 = vmul.f32 1.442695, %v1890_v34  ;;  %v3861_v45 = vpack.c.bf16 %v3080_v44, %v3079_v42  ;;  %v3082_v34 = vld [vmem:[%s5189_s2 + $0x1] ss:$0 sm:$0xff] }
0x15e6   :  { %v1893_v56 = vmul.f32 1.442695, %v1889_v58  ;;  %v3087_v44 = vld [vmem:[%s5190_s30 + $0x1] ss:$0 sm:$0xff] }
0x15e7   :  { %4114 = vpow2.f32 %v1895_v57  ;;  %v1885_v60 = vpop.xlane.xlu0 %1884 }
0x15e8   :  { %4116 = vpow2.f32 %v1893_v56  ;;  %v1891_v61 = vsub.f32 %v1869_v50, %v1885_v60 }
0x15ea   :  { %v1897_v63 = vmul.f32 1.442695, %v1891_v61 }
0x15eb   :  { %v1888_v40 = vpop.xlane.xlu0 %1887 }
0x15ec   :  { %4118 = vpow2.f32 %v1897_v63  ;;  %v1892_v43 = vsub.f32 %v1874_v51, %v1888_v40 }
0x15ee   :  { %v1899_v0 = vmul.f32 1.442695, %v1892_v43 }
0x15f0   :  { %4120 = vpow2.f32 %v1899_v0 }
0x15f1   :  { %v4115_v2 = vpop.eup %4114 }
0x15f2   :  { %v4117_v5 = vpop.eup %4116  ;;  %v1904_v6 = vsel %vm261_vm0, %v4115_v2, 0.0 }
0x15f3   :  { %1905 = vadd.xlane.f32.xlu0 %v1904_v6  ;;  %v1901_v7 = vsel %vm261_vm0, %v4117_v5, 0.0 }
0x15f4   :  { %1902 = vadd.xlane.f32.xlu1 %v1901_v7 }
0x15f6   :  { %v4119_v8 = vpop.eup %4118 }
0x15f7   :  { %v1907_v9 = vsel %vm261_vm0, %v4119_v8, 0.0 }
0x15f8   :  { %1908 = vadd.xlane.f32.xlu1 %v1907_v9 }
0x15fa   :  { %v4121_v11 = vpop.eup %4120 }
0x15fb   :  { %v1910_v12 = vsel %vm261_vm0, %v4121_v11, 0.0 }
0x15fc   :  { %1911 = vadd.xlane.f32.xlu0 %v1910_v12 }
0x1609   :  { %4021 = vrot.lane.b32.xlu1 %v4886_v24, %s4261_s9 }
0x1612   :  { %4026 = vrot.lane.b32.xlu0 %v4891_v19, %s4261_s9 }
0x1680   :  { %v1906_v16 = vpop.xlane.xlu0 %1905 }
0x1681   :  { %v1903_v15 = vpop.xlane.xlu1 %1902 }
0x1682   :  { %4122 = vrcp.f32 %v1903_v15 }
0x1683   :  { %4124 = vrcp.f32 %v1906_v16 }
0x1685   :  { %v1909_v18 = vpop.xlane.xlu1 %1908 }
0x1686   :  { %4126 = vrcp.f32 %v1909_v18  ;;  %v3089_v18 = vld [vmem:[%s5142_s12 + $0x20] sm:$0xff] }
0x1689   :  { %v4022_v21 = vpop.permute.xlu1 %4021  ;;  %v1912_v22 = vpop.xlane.xlu0 %1911 }
0x168a   :  { %v4024_v23 = vunpack.i.h.bf16 %v4022_v21  ;;  %v4023_v25 = vunpack.i.l.bf16 %v4022_v21  ;;  %4128 = vrcp.f32 %v1912_v22  ;;  %v3090_v21 = vld [vmem:[%s5142_s12 + $0x28] sm:$0xff] }
0x168b   :  { %v3865_v22 = vpack.c.bf16 %v3090_v21, %v3089_v18 }
0x168c   :  { %v4123_v10 = vpop.eup %4122  ;;  %v3849_v26 = vpack.c.bf16 %v4024_v23, %v4023_v25  ;;  %v3091_v23 = vld [vmem:[%s5142_s12 + $0x30] sm:$0xff]  ;;  %v3092_v25 = vld [vmem:[%s5142_s12 + $0x38] sm:$0xff] }
0x168d   :  { %v4027_v27 = vpop.permute.xlu0 %4026  ;;  %v1914_v28 = vmul.f32 %v4123_v10, %v4117_v5  ;;  %v4125_v32 = vpop.eup %4124  ;;  %3866 = vmatprep.subr.bf16.mxu0 %v3865_v22  ;;  %v3869_v10 = vpack.c.bf16 %v3092_v25, %v3091_v23 }
0x168e   :  { %v4029_v30 = vunpack.i.h.bf16 %v4027_v27  ;;  %v4028_v24 = vunpack.i.l.bf16 %v4027_v27  ;;  %3850 = vmatprep.subr.bf16.mxu1 %v3849_v26  ;;  %v1916_v36 = vmul.f32 %v4125_v32, %v4115_v2  ;;  %3868 = vmatpush3.bf16.msra.mxu0 %v3865_v22 }
0x168f   :  { %3852 = vmatpush3.bf16.msra.mxu1 %v3849_v26  ;;  %3560 = vmatprep.mubr.msk.f32.mxu1 %vm261_vm0, %v1914_v28 }
0x1690   :  { %v3853_v19 = vpack.c.bf16 %v4029_v30, %v4028_v24  ;;  %v4127_v35 = vpop.eup %4126  ;;  %3870 = vmatprep.subr.bf16.mxu0 %v3869_v10 }
0x1691   :  { %v1918_v38 = vmul.f32 %v4127_v35, %v4119_v8 }
0x1692   :  { %3854 = vmatprep.subr.bf16.mxu1 %v3853_v19  ;;  %3872 = vmatpush3.bf16.msra.mxu0 %v3869_v10 }
0x1693   :  { %3856 = vmatpush3.bf16.msra.mxu1 %v3853_v19 }
0x1694   :  { %v4129_v37 = vpop.eup %4128  ;;  %3858 = vmatprep.subr.bf16.mxu1 %v3857_v41 }
0x1695   :  { %v1920_v31 = vmul.f32 %v4129_v37, %v4121_v11 }
0x1696   :  { %3561 = vmatmul.mubr.msk.f32.vlgmr.msra.gmra.mrb[18].mxu1 %vm261_vm0, %v1916_v36 }
0x1697   :  { %3563 = vmatprep.mubr.msk.f32.mxu1 %vm261_vm0, %v1918_v38  ;;  %3860 = vmatpush3.bf16.msra.mxu1 %v3857_v41 }
0x1698   :  { %3862 = vmatprep.subr.bf16.mxu1 %v3861_v45 }
0x169a   :  { %3564 = vmatmul.mubr.msk.f32.gmra.mrb[20].mxu1 %vm261_vm0, %v1920_v31 }
0x169b   :  { %3864 = vmatpush3.bf16.msra.mxu1 %v3861_v45 }
0x1769   :  { %v3562_v46 = vpop.f32.mrb[18].mxu1 }
0x176a   :  { %v2011_v49 = vpop.f32.mrb[19].mxu1 }
0x176d   :  { %v3565_v62 = vpop.f32.mrb[20].mxu1 }
0x176e   :  { %v2021_v50 = vpop.f32.mrb[21].mxu1 }
0x176f   :  { %2032 = vrot.lane.b32.xlu1 %v2021_v50, %s4254_s10 }
0x1773   :  { %2034 = vrot.lane.b32.xlu1 %v3565_v62, %s4254_s10  ;;  %v3088_v62 = vld [vmem:[%s5141_s11 + $0x1] ss:$0 sm:$0xff]  ;;  %s4262_s11 = smov 32  }
0x17e1   :  { %v2033_v51 = vpop.permute.xlu1 %2032 }
0x17e2   :  { %v2038_v3 = vsel %vm483_vm3, %v2011_v49, %v2033_v51 }
0x17e3   :  { %3574 = vmatprep.mubr.msk.f32.mxu1 %vm261_vm0, %v2038_v3 }
0x17e5   :  { %v2035_v33 = vpop.permute.xlu1 %2034 }
0x17e6   :  { %v2039_v52 = vsel %vm483_vm3, %v3562_v46, %v2035_v33 }
0x17e7   :  { %3575 = vmatmul.mubr.msk.f32.vlgmr.msra.gmra.mrb[22].mxu1 %vm261_vm0, %v2039_v52 }
0x18ba   :  { %v3576_v54 = vpop.f32.mrb[22].mxu1 }
0x18bb   :  { %v2131_v58 = vadd.f32 %v3576_v54, %v3082_v34  ;;  %v2125_v57 = vpop.f32.mrb[23].mxu1 }
0x18bc   :  { %v2126_v56 = vadd.f32 %v3082_v34, %v2125_v57 }
0x18bd   :  { %v2135_v60 = vadd.f32 %v2131_v58, %v4875_v14  ;;  %v3093_v58 = vld [vmem:[#allocation2 + $0x1] ss:$0 sm:$0xff] }
0x18be   :  { %v2134_v61 = vadd.f32 %v2126_v56, %v4873_v13 }
0x18bf   :  { %v2143_v63 = vsel %vm261_vm0, %v2135_v60, 0.0 }
0x18c0   :  { %2144 = vadd.xlane.f32.xlu1 %v2143_v63  ;;  %v2140_v40 = vsel %vm261_vm0, %v2134_v61, 0.0 }
0x18c1   :  { %2141 = vadd.xlane.f32.xlu0 %v2140_v40 }
0x18d1   :  { %4031 = vrot.lane.b32.xlu1 %v4566_v1, %s4261_s9 }
0x18d5   :  { %4041 = vrot.lane.b32.xlu1 %v4682_v59, %s4261_s9 }
0x18d9   :  { %4046 = vrot.lane.b32.xlu1 %v4706_v20, %s4261_s9 }
0x194d   :  { %v2145_v43 = vpop.xlane.xlu1 %2144 }
0x194e   :  { %v2147_v0 = vmul.f32 0.03125, %v2145_v43  ;;  %v2142_v14 = vpop.xlane.xlu0 %2141 }
0x194f   :  { %v2146_v2 = vmul.f32 0.03125, %v2142_v14 }
0x1950   :  { %v2149_v13 = vsub.f32 %v2135_v60, %v2147_v0 }
0x1951   :  { %v2148_v5 = vsub.f32 %v2134_v61, %v2146_v2  ;;  %v4032_v6 = vpop.permute.xlu1 %4031 }
0x1952   :  { %v4034_v7 = vunpack.i.h.bf16 %v4032_v6  ;;  %v4033_v8 = vunpack.i.l.bf16 %v4032_v6  ;;  %v2151_v15 = vmul.f32 %v2149_v13, %v2149_v13 }
0x1953   :  { %v2150_v9 = vmul.f32 %v2148_v5, %v2148_v5 }
0x1954   :  { %v3873_v11 = vpack.c.bf16 %v4034_v7, %v4033_v8  ;;  %v2155_v16 = vsel %vm261_vm0, %v2151_v15, 0.0 }
0x1955   :  { %v2152_v12 = vsel %vm261_vm0, %v2150_v9, 0.0  ;;  %v4042_v24 = vpop.permute.xlu1 %4041 }
0x1956   :  { %3875 = vmatprep.subr.msk.bf16.mxu1 %vm4584_vm4, %v3873_v11  ;;  %2153 = vadd.xlane.f32.xlu0 %v2152_v12  ;;  %v4044_v35 = vunpack.i.h.bf16 %v4042_v24  ;;  %v4043_v37 = vunpack.i.l.bf16 %v4042_v24 }
0x1957   :  { %3878 = vmatpush3.bf16.xpose.msk.msra.mxu1 %vm4584_vm4, %v3873_v11 }
0x1958   :  { %v3885_v39 = vpack.c.bf16 %v4044_v35, %v4043_v37 }
0x1959   :  { %v4047_v41 = vpop.permute.xlu1 %4046 }
0x195a   :  { %2156 = vadd.xlane.f32.xlu0 %v2155_v16  ;;  %v4049_v46 = vunpack.i.h.bf16 %v4047_v41  ;;  %v4048_v49 = vunpack.i.l.bf16 %v4047_v41 }
0x195c   :  { %v3891_v52 = vpack.c.bf16 %v4049_v46, %v4048_v49 }
0x1970   :  { %4036 = vrot.lane.b32.xlu0 %v4570_v4, %s4261_s9 }
0x19e3   :  { %v2154_v26 = vpop.xlane.xlu0 %2153 }
0x19e4   :  { %v2158_v27 = vmul.f32 0.03125, %v2154_v26 }
0x19e6   :  { %v2160_v28 = vadd.f32 1e-05, %v2158_v27 }
0x19e7   :  { %v2157_v30 = vpop.xlane.xlu0 %2156 }
0x19e8   :  { %4130 = vrsqrt.f32 %v2160_v28  ;;  %v2159_v19 = vmul.f32 0.03125, %v2157_v30 }
0x19ea   :  { %v2161_v32 = vadd.f32 1e-05, %v2159_v19 }
0x19eb   :  { %v4037_v36 = vpop.permute.xlu0 %4036 }
0x19ec   :  { %4132 = vrsqrt.f32 %v2161_v32  ;;  %v4039_v38 = vunpack.i.h.bf16 %v4037_v36  ;;  %v4038_v31 = vunpack.i.l.bf16 %v4037_v36 }
0x19ee   :  { %v3879_v29 = vpack.c.bf16 %v4039_v38, %v4038_v31 }
0x19f0   :  { %3881 = vmatprep.subr.msk.bf16.mxu1 %vm4584_vm4, %v3879_v29 }
0x19f1   :  { %3884 = vmatpush3.bf16.xpose.msk.msra.mxu1 %vm4584_vm4, %v3879_v29 }
0x19f2   :  { %v4131_v42 = vpop.eup %4130  ;;  %3887 = vmatprep.subr.msk.bf16.mxu1 %vm4584_vm4, %v3885_v39 }
0x19f3   :  { %v2164_v45 = vmul.f32 %v4131_v42, %v2148_v5 }
0x19f5   :  { %v2172_v50 = vmul.f32 %v3087_v44, %v2164_v45 }
0x19f6   :  { %v4133_v51 = vpop.eup %4132 }
0x19f7   :  { %v2165_v3 = vmul.f32 %v4133_v51, %v2149_v13  ;;  %v4989_v33 = vadd.f32 %v3088_v62, %v2172_v50 }
0x19f9   :  { %v2173_v34 = vmul.f32 %v3087_v44, %v2165_v3  ;;  %3585 = vmatprep.mubr.msk.f32.mxu0 %vm261_vm0, %v4989_v33  ;;  %3890 = vmatpush3.bf16.xpose.msk.msra.mxu1 %vm4584_vm4, %v3885_v39 }
0x19fa   :  { %3893 = vmatprep.subr.msk.bf16.mxu1 %vm4584_vm4, %v3891_v52 }
0x19fb   :  { %v4997_v54 = vadd.f32 %v3088_v62, %v2173_v34 }
0x19fd   :  { %3586 = vmatmul.mubr.msk.f32.vlgmr.msra.gmra.mrb[22].mxu0 %vm261_vm0, %v4997_v54 }
0x1a01   :  { %3896 = vmatpush3.bf16.xpose.msk.msra.mxu1 %vm4584_vm4, %v3891_v52 }
0x1ad0   :  { %v3587_v57 = vpop.f32.mrb[22].mxu0 }
0x1ad1   :  { %v2273_v56 = vadd.f32 %v3587_v57, %v3093_v58  ;;  %v2267_v60 = vpop.f32.mrb[23].mxu0 }
0x1ad2   :  { %v2268_v61 = vadd.f32 %v3093_v58, %v2267_v60 }
0x1ad3   :  { %2280 = vrot.lane.b32.xlu1 %v2273_v56, %s4259_s15  ;;  %v2285_v40 = vmul.f32 0.25, %v2273_v56 }
0x1ad4   :  { %v2284_v63 = vmul.f32 0.25, %v2268_v61  ;;  %2278 = vrot.lane.b32.xlu0 %v2268_v61, %s4259_s15 }
0x1ad6   :  { %3604 = vmatprep.mubr.msk.f32.mxu1 %vm483_vm3, %v2284_v63 }
0x1ad7   :  { %3605 = vmatmul.mubr.msk.f32.vlgmr.msra.gmra.mrb[24].mxu1 %vm483_vm3, %v2285_v40 }
0x1b45   :  { %v2281_v43 = vpop.permute.xlu1 %2280 }
0x1b46   :  { %v2279_v0 = vpop.permute.xlu0 %2278  ;;  %v2287_v17 = vmul.f32 0.25, %v2281_v43 }
0x1b47   :  { %v2286_v14 = vmul.f32 0.25, %v2279_v0 }
0x1b49   :  { %3607 = vmatprep.mubr.msk.f32.mxu1 %vm483_vm3, %v2286_v14  ;;  %v3112_v14 = vld [vmem:[%s5146_s16 + $0x20] sm:$0xff] }
0x1b4a   :  { %3608 = vmatmul.mubr.msk.f32.gmra.mrb[26].mxu1 %vm483_vm3, %v2287_v17  ;;  %v3113_v17 = vld [vmem:[%s5146_s16 + $0x28] sm:$0xff] }
0x1baa   :  { %v3606_v2 = vpop.f32.mrb[24].mxu1 }
0x1bab   :  { %v2404_v13 = vadd.f32 %v3606_v2, %v4737_v47  ;;  %v2398_v5 = vpop.f32.mrb[25].mxu1  ;;  %v3114_v2 = vld [vmem:[%s5146_s16 + $0x30] sm:$0xff] }
0x1bac   :  { %v2399_v6 = vadd.f32 %v2398_v5, %v4742_v48  ;;  %v3115_v5 = vld [vmem:[%s5146_s16 + $0x38] sm:$0xff] }
0x1bad   :  { %v2420_v7 = vsel %vm1108_vm5, %v2404_v13, -inf }
0x1bae   :  { %2421 = vmax.xlane.f32.xlu1 %v2420_v7  ;;  %v2417_v8 = vsel %vm1108_vm5, %v2399_v6, -inf }
0x1baf   :  { %2418 = vmax.xlane.f32.xlu0 %v2417_v8 }
0x1bbf   :  { %4051 = vrot.lane.b32.xlu1 %v4566_v1, %s4262_s11 }
0x1c1d   :  { %v3609_v9 = vpop.f32.mrb[26].mxu1 }
0x1c1e   :  { %v2408_v11 = vpop.f32.mrb[27].mxu1  ;;  %v2414_v15 = vadd.f32 %v3609_v9, %v4758_v55 }
0x1c1f   :  { %v2409_v12 = vadd.f32 %v2408_v11, %v4753_v53 }
0x1c20   :  { %v2426_v48 = vsel %vm1108_vm5, %v2414_v15, -inf }
0x1c21   :  { %v2423_v47 = vsel %vm1108_vm5, %v2409_v12, -inf }
0x1c22   :  { %2424 = vmax.xlane.f32.xlu0 %v2423_v47 }
0x1c26   :  { %2427 = vmax.xlane.f32.xlu0 %v2426_v48 }
0x1c3b   :  { %v2422_v16 = vpop.xlane.xlu1 %2421 }
0x1c3c   :  { %v2430_v18 = vsub.f32 %v2404_v13, %v2422_v16  ;;  %v2419_v21 = vpop.xlane.xlu0 %2418  ;;  %v3913_v13 = vpack.c.bf16 %v3113_v17, %v3112_v14  ;;  %v3116_v16 = vld [vmem:[#allocation5 + $0x1] ss:$0 sm:$0xff]  ;;  %v3136_v14 = vld [vmem:[%s5152_s22 + $0x70] sm:$0xff]  ;;  %v3137_v17 = vld [vmem:[%s5152_s22 + $0x78] sm:$0xff] }
0x1c3d   :  { %v2429_v22 = vsub.f32 %v2399_v6, %v2419_v21  ;;  %v3917_v6 = vpack.c.bf16 %v3115_v5, %v3114_v2  ;;  %v3941_v2 = vpack.c.bf16 %v3137_v17, %v3136_v14 }
0x1c3e   :  { %v2435_v23 = vmul.f32 1.442695, %v2430_v18 }
0x1c3f   :  { %v2433_v25 = vmul.f32 1.442695, %v2429_v22  ;;  %v4052_v10 = vpop.permute.xlu1 %4051 }
0x1c40   :  { %4134 = vpow2.f32 %v2435_v23  ;;  %v4054_v1 = vunpack.i.h.bf16 %v4052_v10  ;;  %v4053_v26 = vunpack.i.l.bf16 %v4052_v10 }
0x1c41   :  { %4136 = vpow2.f32 %v2433_v25 }
0x1c42   :  { %v3897_v53 = vpack.c.bf16 %v4054_v1, %v4053_v26 }
0x1c44   :  { %3898 = vmatprep.subr.bf16.mxu0 %v3897_v53 }
0x1c45   :  { %3900 = vmatpush3.bf16.msra.mxu0 %v3897_v53 }
0x1c4a   :  { %v4135_v55 = vpop.eup %4134 }
0x1c4b   :  { %v4137_v27 = vpop.eup %4136  ;;  %v2444_v28 = vsel %vm1108_vm5, %v4135_v55, 0.0 }
0x1c4c   :  { %2445 = vadd.xlane.f32.xlu0 %v2444_v28  ;;  %v2441_v30 = vsel %vm1108_vm5, %v4137_v27, 0.0 }
0x1c4d   :  { %2442 = vadd.xlane.f32.xlu1 %v2441_v30 }
0x1c5e   :  { %4061 = vrot.lane.b32.xlu1 %v4682_v59, %s4262_s11 }
0x1caf   :  { %v2425_v24 = vpop.xlane.xlu0 %2424 }
0x1cb0   :  { %v2431_v19 = vsub.f32 %v2409_v12, %v2425_v24 }
0x1cb2   :  { %v2437_v32 = vmul.f32 1.442695, %v2431_v19 }
0x1cb3   :  { %v2428_v35 = vpop.xlane.xlu0 %2427 }
0x1cb4   :  { %4138 = vpow2.f32 %v2437_v32  ;;  %v2432_v36 = vsub.f32 %v2414_v15, %v2428_v35 }
0x1cb6   :  { %v2439_v37 = vmul.f32 1.442695, %v2432_v36  ;;  %v3124_v36 = vld [vmem:[%s5150_s20 + $0x28] sm:$0xff] }
0x1cb8   :  { %4140 = vpow2.f32 %v2439_v37 }
0x1cbe   :  { %v4139_v38 = vpop.eup %4138 }
0x1cbf   :  { %v2447_v31 = vsel %vm1108_vm5, %v4139_v38, 0.0 }
0x1cc0   :  { %2448 = vadd.xlane.f32.xlu1 %v2447_v31  ;;  %v3126_v31 = vld [vmem:[%s5150_s20 + $0x38] sm:$0xff] }
0x1cc2   :  { %v4141_v29 = vpop.eup %4140 }
0x1cc3   :  { %v2450_v39 = vsel %vm1108_vm5, %v4141_v29, 0.0 }
0x1cc4   :  { %2451 = vadd.xlane.f32.xlu0 %v2450_v39  ;;  %v3130_v39 = vld [vmem:[%s5152_s22 + $0x40] sm:$0xff] }
0x1cd1   :  { %4066 = vrot.lane.b32.xlu1 %v4706_v20, %s4262_s11 }
0x1cd9   :  { %v2446_v44 = vpop.xlane.xlu0 %2445 }
0x1cda   :  { %v2443_v59 = vpop.xlane.xlu1 %2442  ;;  %4056 = vrot.lane.b32.xlu0 %v4570_v4, %s4262_s11 }
0x1cdb   :  { %4142 = vrcp.f32 %v2443_v59  ;;  %v3131_v59 = vld [vmem:[%s5152_s22 + $0x48] sm:$0xff] }
0x1cdc   :  { %4144 = vrcp.f32 %v2446_v44  ;;  %v3133_v44 = vld [vmem:[%s5152_s22 + $0x58] sm:$0xff] }
0x1cde   :  { %v4062_v45 = vpop.permute.xlu1 %4061 }
0x1cdf   :  { %v4064_v50 = vunpack.i.h.bf16 %v4062_v45  ;;  %v4063_v51 = vunpack.i.l.bf16 %v4062_v45 }
0x1ce1   :  { %v3905_v58 = vpack.c.bf16 %v4064_v50, %v4063_v51 }
0x1ce5   :  { %v4143_v41 = vpop.eup %4142 }
0x1ce6   :  { %v2454_v42 = vmul.f32 %v4143_v41, %v4137_v27  ;;  %v4145_v60 = vpop.eup %4144  ;;  %v3132_v41 = vld [vmem:[%s5152_s22 + $0x50] sm:$0xff] }
0x1ce7   :  { %v2456_v63 = vmul.f32 %v4145_v60, %v4135_v55  ;;  %v3933_v45 = vpack.c.bf16 %v3133_v44, %v3132_v41 }
0x1ce8   :  { %3626 = vmatprep.mubr.msk.f32.mxu0 %vm1108_vm5, %v2454_v42  ;;  %v3929_v42 = vpack.c.bf16 %v3131_v59, %v3130_v39  ;;  %v3145_v59 = vld [vmem:[%s5155_s25 + $0x1] ss:$0 sm:$0xff] }
0x1cea   :  { %3930 = vmatprep.subr.bf16.mxu1 %v3929_v42 }
0x1ceb   :  { %3932 = vmatpush3.bf16.msra.mxu1 %v3929_v42 }
0x1cec   :  { %3934 = vmatprep.subr.bf16.mxu1 %v3933_v45 }
0x1cef   :  { %3936 = vmatpush3.bf16.msra.mxu1 %v3933_v45 }
0x1d4d   :  { %v2449_v46 = vpop.xlane.xlu1 %2448 }
0x1d4e   :  { %4146 = vrcp.f32 %v2449_v46  ;;  %v3134_v46 = vld [vmem:[%s5152_s22 + $0x60] sm:$0xff] }
0x1d51   :  { %v2452_v49 = vpop.xlane.xlu0 %2451  ;;  %v4067_v20 = vpop.permute.xlu1 %4066 }
0x1d52   :  { %v4069_v4 = vunpack.i.h.bf16 %v4067_v20  ;;  %v4068_v57 = vunpack.i.l.bf16 %v4067_v20  ;;  %4148 = vrcp.f32 %v2452_v49  ;;  %v3135_v49 = vld [vmem:[%s5152_s22 + $0x68] sm:$0xff] }
0x1d54   :  { %v3909_v56 = vpack.c.bf16 %v4069_v4, %v4068_v57  ;;  %v3121_v4 = vld [vmem:[%s5148_s18 + $0x1] ss:$0 sm:$0xff] }
0x1d55   :  { %v4057_v62 = vpop.permute.xlu0 %4056 }
0x1d56   :  { %v4059_v3 = vunpack.i.h.bf16 %v4057_v62  ;;  %v4058_v52 = vunpack.i.l.bf16 %v4057_v62  ;;  %v3937_v62 = vpack.c.bf16 %v3135_v49, %v3134_v46 }
0x1d58   :  { %v3901_v34 = vpack.c.bf16 %v4059_v3, %v4058_v52  ;;  %v4147_v61 = vpop.eup %4146  ;;  %3938 = vmatprep.subr.bf16.mxu1 %v3937_v62 }
0x1d59   :  { %v2458_v43 = vmul.f32 %v4147_v61, %v4139_v38  ;;  %v3125_v38 = vld [vmem:[%s5150_s20 + $0x30] sm:$0xff]  ;;  %3940 = vmatpush3.bf16.msra.mxu1 %v3937_v62 }
0x1d5a   :  { %3902 = vmatprep.subr.bf16.mxu0 %v3901_v34  ;;  %3942 = vmatprep.subr.bf16.mxu1 %v3941_v2 }
0x1d5b   :  { %3904 = vmatpush3.bf16.msra.mxu0 %v3901_v34 }
0x1d5c   :  { %3906 = vmatprep.subr.bf16.mxu0 %v3905_v58  ;;  %v4149_v40 = vpop.eup %4148 }
0x1d5d   :  { %v2460_v0 = vmul.f32 %v4149_v40, %v4141_v29  ;;  %v3925_v29 = vpack.c.bf16 %v3126_v31, %v3125_v38  ;;  %3944 = vmatpush3.bf16.msra.mxu1 %v3941_v2  ;;  %v3144_v38 = vld [vmem:[%s5154_s24 + $0x1] ss:$0 sm:$0xff] }
0x1d5f   :  { %3908 = vmatpush3.bf16.msra.mxu0 %v3905_v58 }
0x1d60   :  { %3910 = vmatprep.subr.bf16.mxu0 %v3909_v56 }
0x1d63   :  { %3912 = vmatpush3.bf16.msra.mxu0 %v3909_v56  ;;  %v3122_v56 = vld [vmem:[%s5149_s19 + $0x1] ss:$0 sm:$0xff] }
0x1d64   :  { %3914 = vmatprep.subr.bf16.mxu0 %v3913_v13 }
0x1d66   :  { %3627 = vmatmul.mubr.msk.f32.vlgmr.msra.gmra.mrb[24].mxu0 %vm1108_vm5, %v2456_v63 }
0x1d67   :  { %3629 = vmatprep.mubr.msk.f32.mxu0 %vm1108_vm5, %v2458_v43  ;;  %3916 = vmatpush3.bf16.msra.mxu0 %v3913_v13  ;;  %v3127_v13 = vld [vmem:[#allocation7 + $0x1] ss:$0 sm:$0xff] }
0x1d68   :  { %3918 = vmatprep.subr.bf16.mxu0 %v3917_v6 }
0x1d6a   :  { %3630 = vmatmul.mubr.msk.f32.gmra.mrb[26].mxu0 %vm1108_vm5, %v2460_v0 }
0x1d6b   :  { %3920 = vmatpush3.bf16.msra.mxu0 %v3917_v6 }
0x1e39   :  { %v3628_v7 = vpop.f32.mrb[24].mxu0 }
0x1e3a   :  { %v2563_v8 = vpop.f32.mrb[25].mxu0 }
0x1e3d   :  { %v3631_v9 = vpop.f32.mrb[26].mxu0 }
0x1e3e   :  { %2586 = vrot.lane.b32.xlu1 %v3631_v9, %s4254_s10  ;;  %v2573_v11 = vpop.f32.mrb[27].mxu0 }
0x1e3f   :  { %2584 = vrot.lane.b32.xlu0 %v2573_v11, %s4254_s10 }
0x1eb0   :  { %v2587_v12 = vpop.permute.xlu1 %2586 }
0x1eb1   :  { %v2585_v15 = vpop.permute.xlu0 %2584  ;;  %v2591_v48 = vsel %vm483_vm3, %v3628_v7, %v2587_v12  ;;  %v3139_v12 = vld [vmem:[%s5153_s23 + $0x1] ss:$0 sm:$0xff] }
0x1eb2   :  { %v2590_v47 = vsel %vm483_vm3, %v2563_v8, %v2585_v15 }
0x1eb3   :  { %3640 = vmatprep.mubr.msk.f32.mxu0 %vm261_vm0, %v2590_v47 }
0x1eb4   :  { %3641 = vmatmul.mubr.msk.f32.vlgmr.msra.gmra.mrb[28].mxu0 %vm261_vm0, %v2591_v48 }
0x1f87   :  { %v3642_v18 = vpop.f32.mrb[28].mxu0 }
0x1f88   :  { %v2683_v21 = vadd.f32 %v3642_v18, %v3116_v16  ;;  %v2677_v22 = vpop.f32.mrb[29].mxu0 }
0x1f89   :  { %v2678_v23 = vadd.f32 %v3116_v16, %v2677_v22 }
0x1f8a   :  { %v2687_v25 = vadd.f32 %v2683_v21, %v4997_v54 }
0x1f8b   :  { %v2686_v10 = vadd.f32 %v2678_v23, %v4989_v33  ;;  %v3123_v33 = vld [vmem:[%s5150_s20 + $0x20] sm:$0xff] }
0x1f8c   :  { %v2695_v1 = vsel %vm261_vm0, %v2687_v25, 0.0  ;;  %v3921_v37 = vpack.c.bf16 %v3124_v36, %v3123_v33 }
0x1f8d   :  { %2696 = vadd.xlane.f32.xlu1 %v2695_v1  ;;  %v2692_v26 = vsel %vm261_vm0, %v2686_v10, 0.0 }
0x1f8e   :  { %2693 = vadd.xlane.f32.xlu0 %v2692_v26  ;;  %3922 = vmatprep.subr.bf16.mxu0 %v3921_v37 }
0x1f8f   :  { %3924 = vmatpush3.bf16.msra.mxu0 %v3921_v37 }
0x1f90   :  { %3926 = vmatprep.subr.bf16.mxu0 %v3925_v29 }
0x1f93   :  { %3928 = vmatpush3.bf16.msra.mxu0 %v3925_v29 }
0x201a   :  { %v2697_v53 = vpop.xlane.xlu1 %2696 }
0x201b   :  { %v2699_v55 = vmul.f32 0.03125, %v2697_v53  ;;  %v2694_v27 = vpop.xlane.xlu0 %2693 }
0x201c   :  { %v2698_v28 = vmul.f32 0.03125, %v2694_v27 }
0x201d   :  { %v2701_v30 = vsub.f32 %v2687_v25, %v2699_v55 }
0x201e   :  { %v2700_v24 = vsub.f32 %v2686_v10, %v2698_v28 }
0x201f   :  { %v2703_v35 = vmul.f32 %v2701_v30, %v2701_v30 }
0x2020   :  { %v2702_v19 = vmul.f32 %v2700_v24, %v2700_v24 }
0x2021   :  { %v2707_v54 = vsel %vm261_vm0, %v2703_v35, 0.0 }
0x2022   :  { %v2704_v32 = vsel %vm261_vm0, %v2702_v19, 0.0 }
0x2023   :  { %2705 = vadd.xlane.f32.xlu0 %v2704_v32 }
0x2027   :  { %2708 = vadd.xlane.f32.xlu0 %v2707_v54 }
0x20b0   :  { %v2706_v50 = vpop.xlane.xlu0 %2705 }
0x20b1   :  { %v2710_v51 = vmul.f32 0.03125, %v2706_v50 }
0x20b3   :  { %v2712_v3 = vadd.f32 1e-05, %v2710_v51 }
0x20b4   :  { %v2709_v52 = vpop.xlane.xlu0 %2708 }
0x20b5   :  { %4150 = vrsqrt.f32 %v2712_v3  ;;  %v2711_v20 = vmul.f32 0.03125, %v2709_v52 }
0x20b7   :  { %v2713_v34 = vadd.f32 1e-05, %v2711_v20 }
0x20b9   :  { %4152 = vrsqrt.f32 %v2713_v34 }
0x20bf   :  { %v4151_v58 = vpop.eup %4150 }
0x20c0   :  { %v2716_v57 = vmul.f32 %v4151_v58, %v2700_v24 }
0x20c2   :  { %v2724_v60 = vmul.f32 %v3121_v4, %v2716_v57 }
0x20c3   :  { %v4153_v61 = vpop.eup %4152 }
0x20c4   :  { %v2717_v63 = vmul.f32 %v4153_v61, %v2701_v30  ;;  %v2732_v40 = vadd.f32 %v3122_v56, %v2724_v60 }
0x20c6   :  { %v2725_v43 = vmul.f32 %v3121_v4, %v2717_v63  ;;  %3651 = vmatprep.mubr.msk.f32.mxu0 %vm261_vm0, %v2732_v40 }
0x20c8   :  { %v2733_v0 = vadd.f32 %v3122_v56, %v2725_v43 }
0x20ca   :  { %3652 = vmatmul.mubr.msk.f32.vlgmr.msra.gmra.mrb[30].mxu0 %vm261_vm0, %v2733_v0 }
0x219d   :  { %v3653_v5 = vpop.f32.mrb[30].mxu0 }
0x219e   :  { %v2825_v6 = vadd.f32 %v3653_v5, %v3127_v13  ;;  %v2819_v7 = vpop.f32.mrb[31].mxu0 }
0x219f   :  { %v2820_v8 = vadd.f32 %v3127_v13, %v2819_v7 }
0x21a0   :  { %v2829_v11 = vmax.f32 %v2825_v6, 0.0 }
0x21a1   :  { %v2828_v9 = vmax.f32 %v2820_v8, 0.0 }
0x21a3   :  { %3670 = vmatprep.mubr.msk.f32.mxu1 %vm1108_vm5, %v2828_v9 }
0x21a4   :  { %3671 = vmatmul.mubr.msk.f32.vlgmr.msra.gmra.mrb[28].mxu1 %vm1108_vm5, %v2829_v11 }
0x2277   :  { %v3672_v15 = vpop.f32.mrb[28].mxu1 }
0x2278   :  { %v2925_v47 = vadd.f32 %v3672_v15, %v3139_v12  ;;  %v2919_v48 = vpop.f32.mrb[29].mxu1 }
0x2279   :  { %v2920_v16 = vadd.f32 %v3139_v12, %v2919_v48 }
0x227a   :  { %v2929_v18 = vadd.f32 %v2925_v47, %v2733_v0 }
0x227b   :  { %v2928_v21 = vadd.f32 %v2920_v16, %v2732_v40 }
0x227c   :  { %v2937_v22 = vsel %vm261_vm0, %v2929_v18, 0.0 }
0x227d   :  { %2938 = vadd.xlane.f32.xlu0 %v2937_v22  ;;  %v2934_v23 = vsel %vm261_vm0, %v2928_v21, 0.0 }
0x227e   :  { %2935 = vadd.xlane.f32.xlu1 %v2934_v23 }
0x230a   :  { %v2939_v25 = vpop.xlane.xlu0 %2938 }
0x230b   :  { %v2941_v10 = vmul.f32 0.03125, %v2939_v25  ;;  %v2936_v1 = vpop.xlane.xlu1 %2935 }
0x230c   :  { %v2940_v26 = vmul.f32 0.03125, %v2936_v1 }
0x230d   :  { %v2943_v53 = vsub.f32 %v2929_v18, %v2941_v10 }
0x230e   :  { %v2942_v55 = vsub.f32 %v2928_v21, %v2940_v26 }
0x230f   :  { %v2945_v27 = vmul.f32 %v2943_v53, %v2943_v53 }
0x2310   :  { %v2944_v28 = vmul.f32 %v2942_v55, %v2942_v55 }
0x2311   :  { %v2949_v30 = vsel %vm261_vm0, %v2945_v27, 0.0 }
0x2312   :  { %2950 = vadd.xlane.f32.xlu0 %v2949_v30  ;;  %v2946_v24 = vsel %vm261_vm0, %v2944_v28, 0.0 }
0x2313   :  { %2947 = vadd.xlane.f32.xlu1 %v2946_v24 }
0x239f   :  { %v2951_v19 = vpop.xlane.xlu0 %2950 }
0x23a0   :  { %v2953_v32 = vmul.f32 0.03125, %v2951_v19  ;;  %v2948_v35 = vpop.xlane.xlu1 %2947 }
0x23a1   :  { %v2952_v54 = vmul.f32 0.03125, %v2948_v35 }
0x23a2   :  { %v2955_v33 = vadd.f32 1e-05, %v2953_v32 }
0x23a3   :  { %v2954_v36 = vadd.f32 1e-05, %v2952_v54 }
0x23a4   :  { %4154 = vrsqrt.f32 %v2955_v33 }
0x23a5   :  { %4156 = vrsqrt.f32 %v2954_v36 }
0x23ae   :  { %v4155_v37 = vpop.eup %4154 }
0x23af   :  { %v4157_v31 = vpop.eup %4156  ;;  %v2959_v29 = vmul.f32 %v4155_v37, %v2943_v53 }
0x23b0   :  { %v2958_v39 = vmul.f32 %v4157_v31, %v2942_v55 }
0x23b1   :  { %v2967_v41 = vmul.f32 %v3144_v38, %v2959_v29 }
0x23b2   :  { %v2966_v42 = vmul.f32 %v3144_v38, %v2958_v39 }
0x23b3   :  { %v2975_v44 = vadd.f32 %v3145_v59, %v2967_v41 }
0x23b4   :  { %v2974_v45 = vadd.f32 %v3145_v59, %v2966_v42 }
0x23b5   :  { %2977 = vst.msk [vmem:[#allocation8 + $0x8] sm:$0xff] %vm261_vm0, %v2975_v44 }
0x23b6   :  { %2976 = vst.msk [vmem:[#allocation8] sm:$0xff] %vm261_vm0, %v2974_v45 }
0x23b7   :  { %4235 = shalt.err (!%p4232_p0)
}
0x23b8   :  { %s4236_s6 = scalar_lea.hbm %s5156_s26, 256 }
0x23b9   :  { %p4237_p1 = scmp.ne.s32.totalorder %s5156_s26, %s4236_s6  ;;  %p4240_p2 = scmp.lt.u32.totalorder %s4236_s6, %s5156_s26 }
0x23bb   :  { %p4242_p3 = pnand %p4240_p2, %p4237_p1 }
0x23bd   :  { %4245 = shalt.err (!%p4242_p3)
}
0x23be   :  { %s4264_s11 = smov 128   ;;  %s4265_s15 = smov 8  }
0x23bf   :  { %2989 = dma.vmem_to_hbm [thread:$0]  %s2984_s8, 256, %s5156_s26, [#allocation4], %s4264_s11, %s4264_s11, %s4265_s15  }
0x23c0   :  { %4250 = dma.done.wait [#allocation4], 256  }
0x23c1   :  { %4251 = vsyncadd [#allocation4], 4294967040 }
0x23c2   :  { %2993 = vsyncpa [#allocation3], 1 }
0x23c3   :  { %2994 = vsyncpa [#allocation6], 1 }
0x23c4   :  { %2995 = vsyncpa [#allocation4], 1 }

</bundles_post_ra>
